<compile_context>
chip_gen: v5e
topology: v5e:2x2
jax: 0.10.0
libtpu: 0.0.40
codegen_flags: <defaults>
</compile_context>

<pallas_src>
import math
import functools

import jax
import jax.numpy as jnp
from jax import lax
from jax.experimental import pallas as pl
from jax.experimental.pallas import tpu as pltpu

EPS = 1e-5
KMAX = 7
PAD = KMAX // 2  # halo of the largest (7x7) kernel


def _round_up(x, m):
    return (x + m - 1) // m * m


def _vmem_limit_bytes():
    """Generation-aware scoped-VMEM limit (conservative v7x fallback)."""
    try:
        phys = int(pltpu.get_tpu_info().vmem_capacity_bytes)
    except Exception:
        phys = 64 * 1024 * 1024          # v7x has the smallest physical VMEM
    return min(phys * 3 // 4, 96 * 1024 * 1024)


def _pick_row_tile(H, W, Cin, Cout, K, budget_bytes):
    """Largest lane-aligned row tile whose pass-1 working set fits the VMEM budget."""
    CK = Cin * K * K

    def est(tr):
        npix = tr * W
        wslab = npix + (K - 1) * W
        row_w = wslab + (K - 1)
        col = CK * npix * 2                          # bf16 im2col scratch
        xwin = 2 * Cin * _round_up(row_w, 128) * 2   # double-buffered input window
        ztile = 2 * Cout * npix * 2                  # double-buffered bf16 z tile
        wgt = 2 * Cout * CK * 2
        live = Cout * npix * 4 + Cin * wslab * 4     # f32 acc + slab temporaries
        return col + xwin + ztile + wgt + live + (1 << 20)

    cands = [tr for tr in range(H, 0, -1) if H % tr == 0 and (tr * W) % 128 == 0]
    for tr in cands:
        if est(tr) <= budget_bytes:
            return tr
    if cands:
        return cands[-1]    # smallest aligned tile even if over budget
    return H                # no lane-aligned tile exists (odd W): full height, masked stores


# --------------------- pass 1: fused 3-branch conv + per-batch BN stats ---------------------
def _conv_stats_kernel(xw_ref, w_ref, mask_ref, z_ref, stats_ref, col_ref,
                       *, Cin, W, K, npix):
    # xw_ref:   (Cin, row_w)     overlapping, row-flattened input window (bf16)
    # w_ref:    (Cout, Cin*K*K)  fused tap-major/channel-minor weights (bf16)
    # mask_ref: (K, wslab)       0/1 edge masks per horizontal tap offset (bf16)
    # z_ref:    (Cout, npix)     pre-BN conv output tile (bf16, lane-dense)
    # stats_ref:(Cout, 2)        per-batch [sum, sum_sq] (f32), accumulated over row tiles
    # col_ref:  (Cin*K*K, npix)  im2col scratch (bf16)
    r = pl.program_id(1)
    wslab = npix + (K - 1) * W

    # Build the im2col block with static lane slices only:
    #  - per dx: one shifted slab + one 0/1 mask multiply (kills row-wraparound pixels)
    #  - per dy: a pure static sub-slice of that slab.
    for dx in range(K):
        slab = xw_ref[:, dx:dx + wslab] * mask_ref[dx:dx + 1, :]       # (Cin, wslab) bf16
        for dy in range(K):
            t = dy * K + dx
            col_ref[t * Cin:(t + 1) * Cin, :] = slab[:, dy * W:dy * W + npix]

    # Single bf16 MXU matmul with f32 accumulation; contraction = Cin*49.
    z = jnp.dot(w_ref[...], col_ref[...],
                preferred_element_type=jnp.float32)                    # (Cout, npix) f32
    # No conv-bias add: a per-channel bias before train-mode BN cancels exactly.

    z_ref[...] = z.astype(z_ref.dtype)                                 # bf16 inter-pass store

    # Per-batch BN statistics from the f32 accumulator, summed across the row-tile axis.
    @pl.when(r == 0)
    def _():
        stats_ref[...] = jnp.zeros_like(stats_ref)

    s1 = jnp.sum(z, axis=1, keepdims=True)
    s2 = jnp.sum(z * z, axis=1, keepdims=True)
    stats_ref[...] = stats_ref[...] + jnp.concatenate([s1, s2], axis=1)


# --------------------- pass 2: streaming BN-apply + ReLU ---------------------
def _bn_relu_kernel(z_ref, ss_ref, out_ref):
    # ss_ref: (Cout, 2) precomputed [scale, shift]; BN math kept in f32 (v5e has no bf16 VPU).
    scale = ss_ref[:, 0:1]
    shift = ss_ref[:, 1:2]
    zf = z_ref[...].astype(jnp.float32)
    out_ref[...] = jnp.maximum(zf * scale + shift, 0.0)


def multiscale_forward(x_nchw, params):
    """Pallas implementation of Multiscale_layer.forward (fresh module => BN in train mode)."""
    B, Cin, H, W = x_nchw.shape
    Cb = params["w3"].shape[0]            # ch_out // 3 per branch
    Cout = 3 * Cb
    K = KMAX
    CK = Cin * K * K
    HW = H * W

    vmem_limit = _vmem_limit_bytes()
    TR = _pick_row_tile(H, W, Cin, Cout, K, budget_bytes=int(vmem_limit * 0.6))
    R = H // TR
    npix = TR * W
    wslab = npix + (K - 1) * W
    row_w = wslab + (K - 1)

    # ---------- wrapper-side layout plumbing (outside the hot loop) ----------
    x = x_nchw.astype(jnp.float32)
    xv = jnp.pad(x, ((0, 0), (0, 0), (PAD, PAD), (0, 0)))              # vertical halo only
    xf = jnp.pad(xv.reshape(B, Cin, (H + 2 * PAD) * W),
                 ((0, 0), (0, 0), (PAD, PAD))).astype(jnp.bfloat16)    # rows merged into lanes
    # Overlapping row windows (halo of 6 rows + 6 lanes): all in-kernel slicing is static.
    xwin = jnp.stack([xf[:, :, r * npix: r * npix + row_w] for r in range(R)],
                     axis=1)                                           # (B, R, Cin, row_w)

    # 0/1 edge masks: a horizontal tap shift wraps into the neighboring row in the flat
    # layout; the mask zeroes exactly those lanes (periodic in the output x coordinate).
    xcoord = jnp.arange(wslab) % W
    off = jnp.arange(K)[:, None] - PAD
    mask = (((xcoord[None, :] + off) >= 0) &
            ((xcoord[None, :] + off) < W)).astype(jnp.bfloat16)        # (K, wslab)

    def embed(w, k):                      # zero-embed a kxk kernel into the 7x7 tap grid
        p = (K - k) // 2
        return jnp.pad(w, ((0, 0), (0, 0), (p, p), (p, p)))

    # PyTorch forward channel order: cat(x3, cat(x1, x2)) == [7x7, 3x3, 5x5].
    wfull = jnp.concatenate(
        [embed(params["w7"], 7), embed(params["w3"], 3), embed(params["w5"], 5)], axis=0)
    # im2col row = (dy*7+dx)*Cin + c  ->  flatten weights as (Cout, dy, dx, c), cast bf16.
    wflat = jnp.transpose(wfull, (0, 2, 3, 1)).reshape(Cout, CK).astype(jnp.bfloat16)
    # Conv biases intentionally omitted (cancel exactly under train-mode BatchNorm).

    # ---------- pass 1: fused 49-tap conv + per-batch BN sum/sumsq ----------
    conv = functools.partial(_conv_stats_kernel, Cin=Cin, W=W, K=K, npix=npix)
    z, stats = pl.pallas_call(
        conv,
        grid=(B, R),
        in_specs=[
            pl.BlockSpec((None, None, Cin, row_w), lambda b, r: (b, r, 0, 0)),
            pl.BlockSpec((Cout, CK), lambda b, r: (0, 0)),
            pl.BlockSpec((K, wslab), lambda b, r: (0, 0)),
        ],
        out_specs=[
            pl.BlockSpec((None, Cout, npix), lambda b, r: (b, 0, r)),
            pl.BlockSpec((None, Cout, 2), lambda b, r: (b, 0, 0)),     # accumulator over r
        ],
        out_shape=[
            jax.ShapeDtypeStruct((B, Cout, HW), jnp.bfloat16),
            jax.ShapeDtypeStruct((B, Cout, 2), jnp.float32),
        ],
        scratch_shapes=[pltpu.VMEM((CK, npix), jnp.bfloat16)],
        compiler_params=pltpu.CompilerParams(
            dimension_semantics=("parallel", "arbitrary"),
            vmem_limit_bytes=vmem_limit),
    )(xwin, wflat, mask)

    # ---------- tiny global reduction in plain JAX: fold BN into scale/shift ----------
    gamma = jnp.concatenate([params["g7"], params["g3"], params["g5"]]).astype(jnp.float32)
    beta = jnp.concatenate([params["be7"], params["be3"], params["be5"]]).astype(jnp.float32)
    tot = jnp.sum(stats, axis=0)                                       # (Cout, 2)
    inv_n = 1.0 / float(B * HW)
    mean = tot[:, 0] * inv_n
    # One-pass variance (clamped >= 0). Fine here: no bias and zero-mean weights keep the
    # channel means near zero, so cancellation is negligible at these sizes.
    var = jnp.maximum(tot[:, 1] * inv_n - mean * mean, 0.0)
    scale = gamma * lax.rsqrt(var + EPS)
    shift = beta - mean * scale
    ss = jnp.stack([scale, shift], axis=1)                             # (Cout, 2) f32

    # ---------- pass 2: streaming BN-apply + ReLU, lane-dense output ----------
    out = pl.pallas_call(
        _bn_relu_kernel,
        grid=(B, R),
        in_specs=[
            pl.BlockSpec((None, Cout, npix), lambda b, r: (b, 0, r)),
            pl.BlockSpec((Cout, 2), lambda b, r: (0, 0)),
        ],
        out_specs=pl.BlockSpec((None, Cout, npix), lambda b, r: (b, 0, r)),
        out_shape=jax.ShapeDtypeStruct((B, Cout, HW), jnp.float32),
        compiler_params=pltpu.CompilerParams(
            dimension_semantics=("parallel", "parallel"),
            vmem_limit_bytes=vmem_limit),
    )(z, ss)

    # Output is already channel-major: just reshape the flattened spatial axis back.
    return out.reshape(B, Cout, H, W)


# --------------------------------- pure-JAX reference ---------------------------------
def multiscale_reference(x_nchw, params):
    x = x_nchw.astype(jnp.float32)

    def branch(w, b, g, be, K):
        z = lax.conv_general_dilated(x, w.astype(jnp.float32), (1, 1),
                                     [(K // 2, K // 2)] * 2,
                                     dimension_numbers=("NCHW", "OIHW", "NCHW"),
                                     precision=lax.Precision.HIGHEST)
        z = z + b[None, :, None, None]
        mean = jnp.mean(z, axis=(0, 2, 3), keepdims=True)
        var = jnp.mean((z - mean) ** 2, axis=(0, 2, 3), keepdims=True)
        zn = (z - mean) * lax.rsqrt(var + EPS)
        return jnp.maximum(zn * g[None, :, None, None] + be[None, :, None, None], 0.0)

    y1 = branch(params["w3"], params["b3"], params["g3"], params["be3"], 3)
    y2 = branch(params["w5"], params["b5"], params["g5"], params["be5"], 5)
    y3 = branch(params["w7"], params["b7"], params["g7"], params["be7"], 7)
    return jnp.concatenate([y3, y1, y2], axis=1)


# --------------------------------- deterministic init ---------------------------------
def init_params(key, ch_in, ch_out):
    cb = ch_out // 3
    ks = jax.random.split(key, 6)
    params = {}
    for (kw, kb), K, tag in zip([(ks[0], ks[1]), (ks[2], ks[3]), (ks[4], ks[5])],
                                (3, 5, 7), ("3", "5", "7")):
        fan_in = ch_in * K * K
        bound = 1.0 / math.sqrt(fan_in)
        params["w" + tag] = jax.random.uniform(kw, (cb, ch_in, K, K), jnp.float32, -bound, bound)
        params["b" + tag] = jax.random.uniform(kb, (cb,), jnp.float32, -bound, bound)
        params["g" + tag] = jnp.ones((cb,), jnp.float32)     # BN weight (PyTorch default)
        params["be" + tag] = jnp.zeros((cb,), jnp.float32)   # BN bias  (PyTorch default)
    return params


if __name__ == "__main__":
    key = jax.random.PRNGKey(0)
    kx, kp = jax.random.split(key)

    ch_in, ch_out = 4, 12                 # ch_out // 3 == 4 per branch
    B, H, W = 2, 16, 16
    x = jax.random.normal(kx, (B, ch_in, H, W), jnp.float32)
    params = init_params(kp, ch_in, ch_out)

    out = jax.block_until_ready(multiscale_forward(x, params))
    ref = jax.block_until_ready(multiscale_reference(x, params))

    assert out.shape == (B, ch_out, H, W), out.shape
    max_err = float(jnp.max(jnp.abs(out - ref)))
    # bf16 MXU inputs + bf16 inter-pass z bound the post-BN absolute error at O(1e-2)
    # for these unit-variance activations; 5e-2 is a comfortable envelope vs the f32 ref.
    assert jnp.allclose(out, ref, atol=5e-2, rtol=5e-2), max_err

    print("KERNEL_OK")
</pallas_src>

<mosaic_0001>
module attributes {stable_mosaic.version = 11 : i64} {
  func.func @_conv_stats_kernel(%arg0: i32, %arg1: i32, %arg2: memref<1x1x4x358xbf16, #tpu.memory_space<vmem>>, %arg3: memref<12x196xbf16, #tpu.memory_space<vmem>>, %arg4: memref<7x352xbf16, #tpu.memory_space<vmem>>, %arg5: memref<1x12x256xbf16, #tpu.memory_space<vmem>>, %arg6: memref<1x12x2xf32, #tpu.memory_space<vmem>>, %arg7: memref<196x256xbf16, #tpu.memory_space<vmem>>) attributes {dimension_semantics = [#tpu.dimension_semantics<parallel>, #tpu.dimension_semantics<arbitrary>], iteration_bounds = array<i64: 2, 1>, scalar_prefetch = 0 : i64, scratch_operands = 1 : i64, tpu.core_type = #tpu.core_type<tc>, window_params = [{transform_indices = @transform_0, window_bounds = array<i64: 1, 1, 4, 358>}, {pipeline_mode = #tpu.pipeline_mode<synchronous>, transform_indices = @transform_1, window_bounds = array<i64: 12, 196>}, {pipeline_mode = #tpu.pipeline_mode<synchronous>, transform_indices = @transform_2, window_bounds = array<i64: 7, 352>}, {transform_indices = @transform_3, window_bounds = array<i64: 1, 12, 256>}, {transform_indices = @transform_4, window_bounds = array<i64: 1, 12, 2>}]} {
    %c0 = arith.constant 0 : index
    %c0_0 = arith.constant 0 : index
    %c0_1 = arith.constant 0 : index
    %c0_2 = arith.constant 0 : index
    %0 = vector.load %arg2[%c0, %c0_0, %c0_1, %c0_2] : memref<1x1x4x358xbf16, #tpu.memory_space<vmem>>, vector<1x1x4x352xbf16>
    %1 = vector.shape_cast %0 : vector<1x1x4x352xbf16> to vector<4x352xbf16>
    %c0_3 = arith.constant 0 : index
    %c0_4 = arith.constant 0 : index
    %2 = vector.load %arg4[%c0_3, %c0_4] : memref<7x352xbf16, #tpu.memory_space<vmem>>, vector<1x352xbf16>
    %3 = vector.broadcast %2 : vector<1x352xbf16> to vector<4x352xbf16>
    %4 = arith.mulf %1, %3 : vector<4x352xbf16>
    %5 = vector.extract_strided_slice %4 {offsets = [0, 0], sizes = [4, 256], strides = [1, 1]} : vector<4x352xbf16> to vector<4x256xbf16>
    %c0_5 = arith.constant 0 : index
    %c0_6 = arith.constant 0 : index
    %6 = vector.load %arg7[%c0_5, %c0_6] : memref<196x256xbf16, #tpu.memory_space<vmem>>, vector<4x256xbf16>
    tpu.vector_store %arg7[%c0_5, %c0_6], %5 {strides = array<i32>} : memref<196x256xbf16, #tpu.memory_space<vmem>>, vector<4x256xbf16>,
    %7 = vector.extract_strided_slice %4 {offsets = [0, 16], sizes = [4, 256], strides = [1, 1]} : vector<4x352xbf16> to vector<4x256xbf16>
    %c28 = arith.constant 28 : index
    %c0_7 = arith.constant 0 : index
    %8 = vector.load %arg7[%c28, %c0_7] : memref<196x256xbf16, #tpu.memory_space<vmem>>, vector<4x256xbf16>
    tpu.vector_store %arg7[%c28, %c0_7], %7 {strides = array<i32>} : memref<196x256xbf16, #tpu.memory_space<vmem>>, vector<4x256xbf16>,
    %9 = vector.extract_strided_slice %4 {offsets = [0, 32], sizes = [4, 256], strides = [1, 1]} : vector<4x352xbf16> to vector<4x256xbf16>
    %c56 = arith.constant 56 : index
    %c0_8 = arith.constant 0 : index
    %10 = vector.load %arg7[%c56, %c0_8] : memref<196x256xbf16, #tpu.memory_space<vmem>>, vector<4x256xbf16>
    tpu.vector_store %arg7[%c56, %c0_8], %9 {strides = array<i32>} : memref<196x256xbf16, #tpu.memory_space<vmem>>, vector<4x256xbf16>,
    %11 = vector.extract_strided_slice %4 {offsets = [0, 48], sizes = [4, 256], strides = [1, 1]} : vector<4x352xbf16> to vector<4x256xbf16>
    %c84 = arith.constant 84 : index
    %c0_9 = arith.constant 0 : index
    %12 = vector.load %arg7[%c84, %c0_9] : memref<196x256xbf16, #tpu.memory_space<vmem>>, vector<4x256xbf16>
    tpu.vector_store %arg7[%c84, %c0_9], %11 {strides = array<i32>} : memref<196x256xbf16, #tpu.memory_space<vmem>>, vector<4x256xbf16>,
    %13 = vector.extract_strided_slice %4 {offsets = [0, 64], sizes = [4, 256], strides = [1, 1]} : vector<4x352xbf16> to vector<4x256xbf16>
    %c112 = arith.constant 112 : index
    %c0_10 = arith.constant 0 : index
    %14 = vector.load %arg7[%c112, %c0_10] : memref<196x256xbf16, #tpu.memory_space<vmem>>, vector<4x256xbf16>
    tpu.vector_store %arg7[%c112, %c0_10], %13 {strides = array<i32>} : memref<196x256xbf16, #tpu.memory_space<vmem>>, vector<4x256xbf16>,
    %15 = vector.extract_strided_slice %4 {offsets = [0, 80], sizes = [4, 256], strides = [1, 1]} : vector<4x352xbf16> to vector<4x256xbf16>
    %c140 = arith.constant 140 : index
    %c0_11 = arith.constant 0 : index
    %16 = vector.load %arg7[%c140, %c0_11] : memref<196x256xbf16, #tpu.memory_space<vmem>>, vector<4x256xbf16>
    tpu.vector_store %arg7[%c140, %c0_11], %15 {strides = array<i32>} : memref<196x256xbf16, #tpu.memory_space<vmem>>, vector<4x256xbf16>,
    %17 = vector.extract_strided_slice %4 {offsets = [0, 96], sizes = [4, 256], strides = [1, 1]} : vector<4x352xbf16> to vector<4x256xbf16>
    %c168 = arith.constant 168 : index
    %c0_12 = arith.constant 0 : index
    %18 = vector.load %arg7[%c168, %c0_12] : memref<196x256xbf16, #tpu.memory_space<vmem>>, vector<4x256xbf16>
    tpu.vector_store %arg7[%c168, %c0_12], %17 {strides = array<i32>} : memref<196x256xbf16, #tpu.memory_space<vmem>>, vector<4x256xbf16>,
    %c0_13 = arith.constant 0 : index
    %c0_14 = arith.constant 0 : index
    %c0_15 = arith.constant 0 : index
    %c1 = arith.constant 1 : index
    %19 = vector.load %arg2[%c0_13, %c0_14, %c0_15, %c1] : memref<1x1x4x358xbf16, #tpu.memory_space<vmem>>, vector<1x1x4x352xbf16>
    %20 = vector.shape_cast %19 : vector<1x1x4x352xbf16> to vector<4x352xbf16>
    %c1_16 = arith.constant 1 : index
    %c0_17 = arith.constant 0 : index
    %21 = vector.load %arg4[%c1_16, %c0_17] : memref<7x352xbf16, #tpu.memory_space<vmem>>, vector<1x352xbf16>
    %22 = vector.broadcast %21 : vector<1x352xbf16> to vector<4x352xbf16>
    %23 = arith.mulf %20, %22 : vector<4x352xbf16>
    %24 = vector.extract_strided_slice %23 {offsets = [0, 0], sizes = [4, 256], strides = [1, 1]} : vector<4x352xbf16> to vector<4x256xbf16>
    %c4 = arith.constant 4 : index
    %c0_18 = arith.constant 0 : index
    %25 = vector.load %arg7[%c4, %c0_18] : memref<196x256xbf16, #tpu.memory_space<vmem>>, vector<4x256xbf16>
    tpu.vector_store %arg7[%c4, %c0_18], %24 {strides = array<i32>} : memref<196x256xbf16, #tpu.memory_space<vmem>>, vector<4x256xbf16>,
    %26 = vector.extract_strided_slice %23 {offsets = [0, 16], sizes = [4, 256], strides = [1, 1]} : vector<4x352xbf16> to vector<4x256xbf16>
    %c32 = arith.constant 32 : index
    %c0_19 = arith.constant 0 : index
    %27 = vector.load %arg7[%c32, %c0_19] : memref<196x256xbf16, #tpu.memory_space<vmem>>, vector<4x256xbf16>
    tpu.vector_store %arg7[%c32, %c0_19], %26 {strides = array<i32>} : memref<196x256xbf16, #tpu.memory_space<vmem>>, vector<4x256xbf16>,
    %28 = vector.extract_strided_slice %23 {offsets = [0, 32], sizes = [4, 256], strides = [1, 1]} : vector<4x352xbf16> to vector<4x256xbf16>
    %c60 = arith.constant 60 : index
    %c0_20 = arith.constant 0 : index
    %29 = vector.load %arg7[%c60, %c0_20] : memref<196x256xbf16, #tpu.memory_space<vmem>>, vector<4x256xbf16>
    tpu.vector_store %arg7[%c60, %c0_20], %28 {strides = array<i32>} : memref<196x256xbf16, #tpu.memory_space<vmem>>, vector<4x256xbf16>,
    %30 = vector.extract_strided_slice %23 {offsets = [0, 48], sizes = [4, 256], strides = [1, 1]} : vector<4x352xbf16> to vector<4x256xbf16>
    %c88 = arith.constant 88 : index
    %c0_21 = arith.constant 0 : index
    %31 = vector.load %arg7[%c88, %c0_21] : memref<196x256xbf16, #tpu.memory_space<vmem>>, vector<4x256xbf16>
    tpu.vector_store %arg7[%c88, %c0_21], %30 {strides = array<i32>} : memref<196x256xbf16, #tpu.memory_space<vmem>>, vector<4x256xbf16>,
    %32 = vector.extract_strided_slice %23 {offsets = [0, 64], sizes = [4, 256], strides = [1, 1]} : vector<4x352xbf16> to vector<4x256xbf16>
    %c116 = arith.constant 116 : index
    %c0_22 = arith.constant 0 : index
    %33 = vector.load %arg7[%c116, %c0_22] : memref<196x256xbf16, #tpu.memory_space<vmem>>, vector<4x256xbf16>
    tpu.vector_store %arg7[%c116, %c0_22], %32 {strides = array<i32>} : memref<196x256xbf16, #tpu.memory_space<vmem>>, vector<4x256xbf16>,
    %34 = vector.extract_strided_slice %23 {offsets = [0, 80], sizes = [4, 256], strides = [1, 1]} : vector<4x352xbf16> to vector<4x256xbf16>
    %c144 = arith.constant 144 : index
    %c0_23 = arith.constant 0 : index
    %35 = vector.load %arg7[%c144, %c0_23] : memref<196x256xbf16, #tpu.memory_space<vmem>>, vector<4x256xbf16>
    tpu.vector_store %arg7[%c144, %c0_23], %34 {strides = array<i32>} : memref<196x256xbf16, #tpu.memory_space<vmem>>, vector<4x256xbf16>,
    %36 = vector.extract_strided_slice %23 {offsets = [0, 96], sizes = [4, 256], strides = [1, 1]} : vector<4x352xbf16> to vector<4x256xbf16>
    %c172 = arith.constant 172 : index
    %c0_24 = arith.constant 0 : index
    %37 = vector.load %arg7[%c172, %c0_24] : memref<196x256xbf16, #tpu.memory_space<vmem>>, vector<4x256xbf16>
    tpu.vector_store %arg7[%c172, %c0_24], %36 {strides = array<i32>} : memref<196x256xbf16, #tpu.memory_space<vmem>>, vector<4x256xbf16>,
    %c0_25 = arith.constant 0 : index
    %c0_26 = arith.constant 0 : index
    %c0_27 = arith.constant 0 : index
    %c2 = arith.constant 2 : index
    %38 = vector.load %arg2[%c0_25, %c0_26, %c0_27, %c2] : memref<1x1x4x358xbf16, #tpu.memory_space<vmem>>, vector<1x1x4x352xbf16>
    %39 = vector.shape_cast %38 : vector<1x1x4x352xbf16> to vector<4x352xbf16>
    %c2_28 = arith.constant 2 : index
    %c0_29 = arith.constant 0 : index
    %40 = vector.load %arg4[%c2_28, %c0_29] : memref<7x352xbf16, #tpu.memory_space<vmem>>, vector<1x352xbf16>
    %41 = vector.broadcast %40 : vector<1x352xbf16> to vector<4x352xbf16>
    %42 = arith.mulf %39, %41 : vector<4x352xbf16>
    %43 = vector.extract_strided_slice %42 {offsets = [0, 0], sizes = [4, 256], strides = [1, 1]} : vector<4x352xbf16> to vector<4x256xbf16>
    %c8 = arith.constant 8 : index
    %c0_30 = arith.constant 0 : index
    %44 = vector.load %arg7[%c8, %c0_30] : memref<196x256xbf16, #tpu.memory_space<vmem>>, vector<4x256xbf16>
    tpu.vector_store %arg7[%c8, %c0_30], %43 {strides = array<i32>} : memref<196x256xbf16, #tpu.memory_space<vmem>>, vector<4x256xbf16>,
    %45 = vector.extract_strided_slice %42 {offsets = [0, 16], sizes = [4, 256], strides = [1, 1]} : vector<4x352xbf16> to vector<4x256xbf16>
    %c36 = arith.constant 36 : index
    %c0_31 = arith.constant 0 : index
    %46 = vector.load %arg7[%c36, %c0_31] : memref<196x256xbf16, #tpu.memory_space<vmem>>, vector<4x256xbf16>
    tpu.vector_store %arg7[%c36, %c0_31], %45 {strides = array<i32>} : memref<196x256xbf16, #tpu.memory_space<vmem>>, vector<4x256xbf16>,
    %47 = vector.extract_strided_slice %42 {offsets = [0, 32], sizes = [4, 256], strides = [1, 1]} : vector<4x352xbf16> to vector<4x256xbf16>
    %c64 = arith.constant 64 : index
    %c0_32 = arith.constant 0 : index
    %48 = vector.load %arg7[%c64, %c0_32] : memref<196x256xbf16, #tpu.memory_space<vmem>>, vector<4x256xbf16>
    tpu.vector_store %arg7[%c64, %c0_32], %47 {strides = array<i32>} : memref<196x256xbf16, #tpu.memory_space<vmem>>, vector<4x256xbf16>,
    %49 = vector.extract_strided_slice %42 {offsets = [0, 48], sizes = [4, 256], strides = [1, 1]} : vector<4x352xbf16> to vector<4x256xbf16>
    %c92 = arith.constant 92 : index
    %c0_33 = arith.constant 0 : index
    %50 = vector.load %arg7[%c92, %c0_33] : memref<196x256xbf16, #tpu.memory_space<vmem>>, vector<4x256xbf16>
    tpu.vector_store %arg7[%c92, %c0_33], %49 {strides = array<i32>} : memref<196x256xbf16, #tpu.memory_space<vmem>>, vector<4x256xbf16>,
    %51 = vector.extract_strided_slice %42 {offsets = [0, 64], sizes = [4, 256], strides = [1, 1]} : vector<4x352xbf16> to vector<4x256xbf16>
    %c120 = arith.constant 120 : index
    %c0_34 = arith.constant 0 : index
    %52 = vector.load %arg7[%c120, %c0_34] : memref<196x256xbf16, #tpu.memory_space<vmem>>, vector<4x256xbf16>
    tpu.vector_store %arg7[%c120, %c0_34], %51 {strides = array<i32>} : memref<196x256xbf16, #tpu.memory_space<vmem>>, vector<4x256xbf16>,
    %53 = vector.extract_strided_slice %42 {offsets = [0, 80], sizes = [4, 256], strides = [1, 1]} : vector<4x352xbf16> to vector<4x256xbf16>
    %c148 = arith.constant 148 : index
    %c0_35 = arith.constant 0 : index
    %54 = vector.load %arg7[%c148, %c0_35] : memref<196x256xbf16, #tpu.memory_space<vmem>>, vector<4x256xbf16>
    tpu.vector_store %arg7[%c148, %c0_35], %53 {strides = array<i32>} : memref<196x256xbf16, #tpu.memory_space<vmem>>, vector<4x256xbf16>,
    %55 = vector.extract_strided_slice %42 {offsets = [0, 96], sizes = [4, 256], strides = [1, 1]} : vector<4x352xbf16> to vector<4x256xbf16>
    %c176 = arith.constant 176 : index
    %c0_36 = arith.constant 0 : index
    %56 = vector.load %arg7[%c176, %c0_36] : memref<196x256xbf16, #tpu.memory_space<vmem>>, vector<4x256xbf16>
    tpu.vector_store %arg7[%c176, %c0_36], %55 {strides = array<i32>} : memref<196x256xbf16, #tpu.memory_space<vmem>>, vector<4x256xbf16>,
    %c0_37 = arith.constant 0 : index
    %c0_38 = arith.constant 0 : index
    %c0_39 = arith.constant 0 : index
    %c3 = arith.constant 3 : index
    %57 = vector.load %arg2[%c0_37, %c0_38, %c0_39, %c3] : memref<1x1x4x358xbf16, #tpu.memory_space<vmem>>, vector<1x1x4x352xbf16>
    %58 = vector.shape_cast %57 : vector<1x1x4x352xbf16> to vector<4x352xbf16>
    %c3_40 = arith.constant 3 : index
    %c0_41 = arith.constant 0 : index
    %59 = vector.load %arg4[%c3_40, %c0_41] : memref<7x352xbf16, #tpu.memory_space<vmem>>, vector<1x352xbf16>
    %60 = vector.broadcast %59 : vector<1x352xbf16> to vector<4x352xbf16>
    %61 = arith.mulf %58, %60 : vector<4x352xbf16>
    %62 = vector.extract_strided_slice %61 {offsets = [0, 0], sizes = [4, 256], strides = [1, 1]} : vector<4x352xbf16> to vector<4x256xbf16>
    %c12 = arith.constant 12 : index
    %c0_42 = arith.constant 0 : index
    %63 = vector.load %arg7[%c12, %c0_42] : memref<196x256xbf16, #tpu.memory_space<vmem>>, vector<4x256xbf16>
    tpu.vector_store %arg7[%c12, %c0_42], %62 {strides = array<i32>} : memref<196x256xbf16, #tpu.memory_space<vmem>>, vector<4x256xbf16>,
    %64 = vector.extract_strided_slice %61 {offsets = [0, 16], sizes = [4, 256], strides = [1, 1]} : vector<4x352xbf16> to vector<4x256xbf16>
    %c40 = arith.constant 40 : index
    %c0_43 = arith.constant 0 : index
    %65 = vector.load %arg7[%c40, %c0_43] : memref<196x256xbf16, #tpu.memory_space<vmem>>, vector<4x256xbf16>
    tpu.vector_store %arg7[%c40, %c0_43], %64 {strides = array<i32>} : memref<196x256xbf16, #tpu.memory_space<vmem>>, vector<4x256xbf16>,
    %66 = vector.extract_strided_slice %61 {offsets = [0, 32], sizes = [4, 256], strides = [1, 1]} : vector<4x352xbf16> to vector<4x256xbf16>
    %c68 = arith.constant 68 : index
    %c0_44 = arith.constant 0 : index
    %67 = vector.load %arg7[%c68, %c0_44] : memref<196x256xbf16, #tpu.memory_space<vmem>>, vector<4x256xbf16>
    tpu.vector_store %arg7[%c68, %c0_44], %66 {strides = array<i32>} : memref<196x256xbf16, #tpu.memory_space<vmem>>, vector<4x256xbf16>,
    %68 = vector.extract_strided_slice %61 {offsets = [0, 48], sizes = [4, 256], strides = [1, 1]} : vector<4x352xbf16> to vector<4x256xbf16>
    %c96 = arith.constant 96 : index
    %c0_45 = arith.constant 0 : index
    %69 = vector.load %arg7[%c96, %c0_45] : memref<196x256xbf16, #tpu.memory_space<vmem>>, vector<4x256xbf16>
    tpu.vector_store %arg7[%c96, %c0_45], %68 {strides = array<i32>} : memref<196x256xbf16, #tpu.memory_space<vmem>>, vector<4x256xbf16>,
    %70 = vector.extract_strided_slice %61 {offsets = [0, 64], sizes = [4, 256], strides = [1, 1]} : vector<4x352xbf16> to vector<4x256xbf16>
    %c124 = arith.constant 124 : index
    %c0_46 = arith.constant 0 : index
    %71 = vector.load %arg7[%c124, %c0_46] : memref<196x256xbf16, #tpu.memory_space<vmem>>, vector<4x256xbf16>
    tpu.vector_store %arg7[%c124, %c0_46], %70 {strides = array<i32>} : memref<196x256xbf16, #tpu.memory_space<vmem>>, vector<4x256xbf16>,
    %72 = vector.extract_strided_slice %61 {offsets = [0, 80], sizes = [4, 256], strides = [1, 1]} : vector<4x352xbf16> to vector<4x256xbf16>
    %c152 = arith.constant 152 : index
    %c0_47 = arith.constant 0 : index
    %73 = vector.load %arg7[%c152, %c0_47] : memref<196x256xbf16, #tpu.memory_space<vmem>>, vector<4x256xbf16>
    tpu.vector_store %arg7[%c152, %c0_47], %72 {strides = array<i32>} : memref<196x256xbf16, #tpu.memory_space<vmem>>, vector<4x256xbf16>,
    %74 = vector.extract_strided_slice %61 {offsets = [0, 96], sizes = [4, 256], strides = [1, 1]} : vector<4x352xbf16> to vector<4x256xbf16>
    %c180 = arith.constant 180 : index
    %c0_48 = arith.constant 0 : index
    %75 = vector.load %arg7[%c180, %c0_48] : memref<196x256xbf16, #tpu.memory_space<vmem>>, vector<4x256xbf16>
    tpu.vector_store %arg7[%c180, %c0_48], %74 {strides = array<i32>} : memref<196x256xbf16, #tpu.memory_space<vmem>>, vector<4x256xbf16>,
    %c0_49 = arith.constant 0 : index
    %c0_50 = arith.constant 0 : index
    %c0_51 = arith.constant 0 : index
    %c4_52 = arith.constant 4 : index
    %76 = vector.load %arg2[%c0_49, %c0_50, %c0_51, %c4_52] : memref<1x1x4x358xbf16, #tpu.memory_space<vmem>>, vector<1x1x4x352xbf16>
    %77 = vector.shape_cast %76 : vector<1x1x4x352xbf16> to vector<4x352xbf16>
    %c4_53 = arith.constant 4 : index
    %c0_54 = arith.constant 0 : index
    %78 = vector.load %arg4[%c4_53, %c0_54] : memref<7x352xbf16, #tpu.memory_space<vmem>>, vector<1x352xbf16>
    %79 = vector.broadcast %78 : vector<1x352xbf16> to vector<4x352xbf16>
    %80 = arith.mulf %77, %79 : vector<4x352xbf16>
    %81 = vector.extract_strided_slice %80 {offsets = [0, 0], sizes = [4, 256], strides = [1, 1]} : vector<4x352xbf16> to vector<4x256xbf16>
    %c16 = arith.constant 16 : index
    %c0_55 = arith.constant 0 : index
    %82 = vector.load %arg7[%c16, %c0_55] : memref<196x256xbf16, #tpu.memory_space<vmem>>, vector<4x256xbf16>
    tpu.vector_store %arg7[%c16, %c0_55], %81 {strides = array<i32>} : memref<196x256xbf16, #tpu.memory_space<vmem>>, vector<4x256xbf16>,
    %83 = vector.extract_strided_slice %80 {offsets = [0, 16], sizes = [4, 256], strides = [1, 1]} : vector<4x352xbf16> to vector<4x256xbf16>
    %c44 = arith.constant 44 : index
    %c0_56 = arith.constant 0 : index
    %84 = vector.load %arg7[%c44, %c0_56] : memref<196x256xbf16, #tpu.memory_space<vmem>>, vector<4x256xbf16>
    tpu.vector_store %arg7[%c44, %c0_56], %83 {strides = array<i32>} : memref<196x256xbf16, #tpu.memory_space<vmem>>, vector<4x256xbf16>,
    %85 = vector.extract_strided_slice %80 {offsets = [0, 32], sizes = [4, 256], strides = [1, 1]} : vector<4x352xbf16> to vector<4x256xbf16>
    %c72 = arith.constant 72 : index
    %c0_57 = arith.constant 0 : index
    %86 = vector.load %arg7[%c72, %c0_57] : memref<196x256xbf16, #tpu.memory_space<vmem>>, vector<4x256xbf16>
    tpu.vector_store %arg7[%c72, %c0_57], %85 {strides = array<i32>} : memref<196x256xbf16, #tpu.memory_space<vmem>>, vector<4x256xbf16>,
    %87 = vector.extract_strided_slice %80 {offsets = [0, 48], sizes = [4, 256], strides = [1, 1]} : vector<4x352xbf16> to vector<4x256xbf16>
    %c100 = arith.constant 100 : index
    %c0_58 = arith.constant 0 : index
    %88 = vector.load %arg7[%c100, %c0_58] : memref<196x256xbf16, #tpu.memory_space<vmem>>, vector<4x256xbf16>
    tpu.vector_store %arg7[%c100, %c0_58], %87 {strides = array<i32>} : memref<196x256xbf16, #tpu.memory_space<vmem>>, vector<4x256xbf16>,
    %89 = vector.extract_strided_slice %80 {offsets = [0, 64], sizes = [4, 256], strides = [1, 1]} : vector<4x352xbf16> to vector<4x256xbf16>
    %c128 = arith.constant 128 : index
    %c0_59 = arith.constant 0 : index
    %90 = vector.load %arg7[%c128, %c0_59] : memref<196x256xbf16, #tpu.memory_space<vmem>>, vector<4x256xbf16>
    tpu.vector_store %arg7[%c128, %c0_59], %89 {strides = array<i32>} : memref<196x256xbf16, #tpu.memory_space<vmem>>, vector<4x256xbf16>,
    %91 = vector.extract_strided_slice %80 {offsets = [0, 80], sizes = [4, 256], strides = [1, 1]} : vector<4x352xbf16> to vector<4x256xbf16>
    %c156 = arith.constant 156 : index
    %c0_60 = arith.constant 0 : index
    %92 = vector.load %arg7[%c156, %c0_60] : memref<196x256xbf16, #tpu.memory_space<vmem>>, vector<4x256xbf16>
    tpu.vector_store %arg7[%c156, %c0_60], %91 {strides = array<i32>} : memref<196x256xbf16, #tpu.memory_space<vmem>>, vector<4x256xbf16>,
    %93 = vector.extract_strided_slice %80 {offsets = [0, 96], sizes = [4, 256], strides = [1, 1]} : vector<4x352xbf16> to vector<4x256xbf16>
    %c184 = arith.constant 184 : index
    %c0_61 = arith.constant 0 : index
    %94 = vector.load %arg7[%c184, %c0_61] : memref<196x256xbf16, #tpu.memory_space<vmem>>, vector<4x256xbf16>
    tpu.vector_store %arg7[%c184, %c0_61], %93 {strides = array<i32>} : memref<196x256xbf16, #tpu.memory_space<vmem>>, vector<4x256xbf16>,
    %c0_62 = arith.constant 0 : index
    %c0_63 = arith.constant 0 : index
    %c0_64 = arith.constant 0 : index
    %c5 = arith.constant 5 : index
    %95 = vector.load %arg2[%c0_62, %c0_63, %c0_64, %c5] : memref<1x1x4x358xbf16, #tpu.memory_space<vmem>>, vector<1x1x4x352xbf16>
    %96 = vector.shape_cast %95 : vector<1x1x4x352xbf16> to vector<4x352xbf16>
    %c5_65 = arith.constant 5 : index
    %c0_66 = arith.constant 0 : index
    %97 = vector.load %arg4[%c5_65, %c0_66] : memref<7x352xbf16, #tpu.memory_space<vmem>>, vector<1x352xbf16>
    %98 = vector.broadcast %97 : vector<1x352xbf16> to vector<4x352xbf16>
    %99 = arith.mulf %96, %98 : vector<4x352xbf16>
    %100 = vector.extract_strided_slice %99 {offsets = [0, 0], sizes = [4, 256], strides = [1, 1]} : vector<4x352xbf16> to vector<4x256xbf16>
    %c20 = arith.constant 20 : index
    %c0_67 = arith.constant 0 : index
    %101 = vector.load %arg7[%c20, %c0_67] : memref<196x256xbf16, #tpu.memory_space<vmem>>, vector<4x256xbf16>
    tpu.vector_store %arg7[%c20, %c0_67], %100 {strides = array<i32>} : memref<196x256xbf16, #tpu.memory_space<vmem>>, vector<4x256xbf16>,
    %102 = vector.extract_strided_slice %99 {offsets = [0, 16], sizes = [4, 256], strides = [1, 1]} : vector<4x352xbf16> to vector<4x256xbf16>
    %c48 = arith.constant 48 : index
    %c0_68 = arith.constant 0 : index
    %103 = vector.load %arg7[%c48, %c0_68] : memref<196x256xbf16, #tpu.memory_space<vmem>>, vector<4x256xbf16>
    tpu.vector_store %arg7[%c48, %c0_68], %102 {strides = array<i32>} : memref<196x256xbf16, #tpu.memory_space<vmem>>, vector<4x256xbf16>,
    %104 = vector.extract_strided_slice %99 {offsets = [0, 32], sizes = [4, 256], strides = [1, 1]} : vector<4x352xbf16> to vector<4x256xbf16>
    %c76 = arith.constant 76 : index
    %c0_69 = arith.constant 0 : index
    %105 = vector.load %arg7[%c76, %c0_69] : memref<196x256xbf16, #tpu.memory_space<vmem>>, vector<4x256xbf16>
    tpu.vector_store %arg7[%c76, %c0_69], %104 {strides = array<i32>} : memref<196x256xbf16, #tpu.memory_space<vmem>>, vector<4x256xbf16>,
    %106 = vector.extract_strided_slice %99 {offsets = [0, 48], sizes = [4, 256], strides = [1, 1]} : vector<4x352xbf16> to vector<4x256xbf16>
    %c104 = arith.constant 104 : index
    %c0_70 = arith.constant 0 : index
    %107 = vector.load %arg7[%c104, %c0_70] : memref<196x256xbf16, #tpu.memory_space<vmem>>, vector<4x256xbf16>
    tpu.vector_store %arg7[%c104, %c0_70], %106 {strides = array<i32>} : memref<196x256xbf16, #tpu.memory_space<vmem>>, vector<4x256xbf16>,
    %108 = vector.extract_strided_slice %99 {offsets = [0, 64], sizes = [4, 256], strides = [1, 1]} : vector<4x352xbf16> to vector<4x256xbf16>
    %c132 = arith.constant 132 : index
    %c0_71 = arith.constant 0 : index
    %109 = vector.load %arg7[%c132, %c0_71] : memref<196x256xbf16, #tpu.memory_space<vmem>>, vector<4x256xbf16>
    tpu.vector_store %arg7[%c132, %c0_71], %108 {strides = array<i32>} : memref<196x256xbf16, #tpu.memory_space<vmem>>, vector<4x256xbf16>,
    %110 = vector.extract_strided_slice %99 {offsets = [0, 80], sizes = [4, 256], strides = [1, 1]} : vector<4x352xbf16> to vector<4x256xbf16>
    %c160 = arith.constant 160 : index
    %c0_72 = arith.constant 0 : index
    %111 = vector.load %arg7[%c160, %c0_72] : memref<196x256xbf16, #tpu.memory_space<vmem>>, vector<4x256xbf16>
    tpu.vector_store %arg7[%c160, %c0_72], %110 {strides = array<i32>} : memref<196x256xbf16, #tpu.memory_space<vmem>>, vector<4x256xbf16>,
    %112 = vector.extract_strided_slice %99 {offsets = [0, 96], sizes = [4, 256], strides = [1, 1]} : vector<4x352xbf16> to vector<4x256xbf16>
    %c188 = arith.constant 188 : index
    %c0_73 = arith.constant 0 : index
    %113 = vector.load %arg7[%c188, %c0_73] : memref<196x256xbf16, #tpu.memory_space<vmem>>, vector<4x256xbf16>
    tpu.vector_store %arg7[%c188, %c0_73], %112 {strides = array<i32>} : memref<196x256xbf16, #tpu.memory_space<vmem>>, vector<4x256xbf16>,
    %c0_74 = arith.constant 0 : index
    %c0_75 = arith.constant 0 : index
    %c0_76 = arith.constant 0 : index
    %c6 = arith.constant 6 : index
    %114 = vector.load %arg2[%c0_74, %c0_75, %c0_76, %c6] : memref<1x1x4x358xbf16, #tpu.memory_space<vmem>>, vector<1x1x4x352xbf16>
    %115 = vector.shape_cast %114 : vector<1x1x4x352xbf16> to vector<4x352xbf16>
    %c6_77 = arith.constant 6 : index
    %c0_78 = arith.constant 0 : index
    %116 = vector.load %arg4[%c6_77, %c0_78] : memref<7x352xbf16, #tpu.memory_space<vmem>>, vector<1x352xbf16>
    %117 = vector.broadcast %116 : vector<1x352xbf16> to vector<4x352xbf16>
    %118 = arith.mulf %115, %117 : vector<4x352xbf16>
    %119 = vector.extract_strided_slice %118 {offsets = [0, 0], sizes = [4, 256], strides = [1, 1]} : vector<4x352xbf16> to vector<4x256xbf16>
    %c24 = arith.constant 24 : index
    %c0_79 = arith.constant 0 : index
    %120 = vector.load %arg7[%c24, %c0_79] : memref<196x256xbf16, #tpu.memory_space<vmem>>, vector<4x256xbf16>
    tpu.vector_store %arg7[%c24, %c0_79], %119 {strides = array<i32>} : memref<196x256xbf16, #tpu.memory_space<vmem>>, vector<4x256xbf16>,
    %121 = vector.extract_strided_slice %118 {offsets = [0, 16], sizes = [4, 256], strides = [1, 1]} : vector<4x352xbf16> to vector<4x256xbf16>
    %c52 = arith.constant 52 : index
    %c0_80 = arith.constant 0 : index
    %122 = vector.load %arg7[%c52, %c0_80] : memref<196x256xbf16, #tpu.memory_space<vmem>>, vector<4x256xbf16>
    tpu.vector_store %arg7[%c52, %c0_80], %121 {strides = array<i32>} : memref<196x256xbf16, #tpu.memory_space<vmem>>, vector<4x256xbf16>,
    %123 = vector.extract_strided_slice %118 {offsets = [0, 32], sizes = [4, 256], strides = [1, 1]} : vector<4x352xbf16> to vector<4x256xbf16>
    %c80 = arith.constant 80 : index
    %c0_81 = arith.constant 0 : index
    %124 = vector.load %arg7[%c80, %c0_81] : memref<196x256xbf16, #tpu.memory_space<vmem>>, vector<4x256xbf16>
    tpu.vector_store %arg7[%c80, %c0_81], %123 {strides = array<i32>} : memref<196x256xbf16, #tpu.memory_space<vmem>>, vector<4x256xbf16>,
    %125 = vector.extract_strided_slice %118 {offsets = [0, 48], sizes = [4, 256], strides = [1, 1]} : vector<4x352xbf16> to vector<4x256xbf16>
    %c108 = arith.constant 108 : index
    %c0_82 = arith.constant 0 : index
    %126 = vector.load %arg7[%c108, %c0_82] : memref<196x256xbf16, #tpu.memory_space<vmem>>, vector<4x256xbf16>
    tpu.vector_store %arg7[%c108, %c0_82], %125 {strides = array<i32>} : memref<196x256xbf16, #tpu.memory_space<vmem>>, vector<4x256xbf16>,
    %127 = vector.extract_strided_slice %118 {offsets = [0, 64], sizes = [4, 256], strides = [1, 1]} : vector<4x352xbf16> to vector<4x256xbf16>
    %c136 = arith.constant 136 : index
    %c0_83 = arith.constant 0 : index
    %128 = vector.load %arg7[%c136, %c0_83] : memref<196x256xbf16, #tpu.memory_space<vmem>>, vector<4x256xbf16>
    tpu.vector_store %arg7[%c136, %c0_83], %127 {strides = array<i32>} : memref<196x256xbf16, #tpu.memory_space<vmem>>, vector<4x256xbf16>,
    %129 = vector.extract_strided_slice %118 {offsets = [0, 80], sizes = [4, 256], strides = [1, 1]} : vector<4x352xbf16> to vector<4x256xbf16>
    %c164 = arith.constant 164 : index
    %c0_84 = arith.constant 0 : index
    %130 = vector.load %arg7[%c164, %c0_84] : memref<196x256xbf16, #tpu.memory_space<vmem>>, vector<4x256xbf16>
    tpu.vector_store %arg7[%c164, %c0_84], %129 {strides = array<i32>} : memref<196x256xbf16, #tpu.memory_space<vmem>>, vector<4x256xbf16>,
    %131 = vector.extract_strided_slice %118 {offsets = [0, 96], sizes = [4, 256], strides = [1, 1]} : vector<4x352xbf16> to vector<4x256xbf16>
    %c192 = arith.constant 192 : index
    %c0_85 = arith.constant 0 : index
    %132 = vector.load %arg7[%c192, %c0_85] : memref<196x256xbf16, #tpu.memory_space<vmem>>, vector<4x256xbf16>
    tpu.vector_store %arg7[%c192, %c0_85], %131 {strides = array<i32>} : memref<196x256xbf16, #tpu.memory_space<vmem>>, vector<4x256xbf16>,
    %c0_86 = arith.constant 0 : index
    %c0_87 = arith.constant 0 : index
    %133 = vector.load %arg3[%c0_86, %c0_87] : memref<12x196xbf16, #tpu.memory_space<vmem>>, vector<12x196xbf16>
    %c0_88 = arith.constant 0 : index
    %c0_89 = arith.constant 0 : index
    %134 = vector.load %arg7[%c0_88, %c0_89] : memref<196x256xbf16, #tpu.memory_space<vmem>>, vector<196x256xbf16>
    %cst = arith.constant dense<0.000000e+00> : vector<12x256xf32>
    %135 = tpu.matmul %133, %134, %cst {dimension_numbers = #tpu.dot_dimension_numbers<[1], [0], [0], [1], [0, 0, 1, 1], [], []>} : vector<12x196xbf16>, vector<196x256xbf16>, vector<12x256xf32> -> vector<12x256xf32>
    %136 = arith.truncf %135 : vector<12x256xf32> to vector<12x256xbf16>
    %c0_90 = arith.constant 0 : index
    %c0_91 = arith.constant 0 : index
    %c0_92 = arith.constant 0 : index
    %137 = vector.load %arg5[%c0_90, %c0_91, %c0_92] : memref<1x12x256xbf16, #tpu.memory_space<vmem>>, vector<1x12x256xbf16>
    %138 = vector.shape_cast %137 : vector<1x12x256xbf16> to vector<12x256xbf16>
    %139 = vector.shape_cast %136 : vector<12x256xbf16> to vector<1x12x256xbf16>
    tpu.vector_store %arg5[%c0_90, %c0_91, %c0_92], %139 {strides = array<i32>} : memref<1x12x256xbf16, #tpu.memory_space<vmem>>, vector<1x12x256xbf16>,
    %c0_i32 = arith.constant 0 : i32
    %140 = arith.cmpi eq, %arg1, %c0_i32 : i32
    %141 = arith.extui %140 : i1 to i32
    %c0_i32_93 = arith.constant 0 : i32
    %142 = arith.cmpi ne, %141, %c0_i32_93 : i32
    scf.if %142 {
      %cst_102 = arith.constant 0.000000e+00 : f32
      %155 = vector.broadcast %cst_102 : f32 to vector<12x2xf32>
      %c0_103 = arith.constant 0 : index
      %c0_104 = arith.constant 0 : index
      %c0_105 = arith.constant 0 : index
      %156 = vector.load %arg6[%c0_103, %c0_104, %c0_105] : memref<1x12x2xf32, #tpu.memory_space<vmem>>, vector<1x12x2xf32>
      %157 = vector.shape_cast %156 : vector<1x12x2xf32> to vector<12x2xf32>
      %158 = vector.shape_cast %155 : vector<12x2xf32> to vector<1x12x2xf32>
      tpu.vector_store %arg6[%c0_103, %c0_104, %c0_105], %158 {strides = array<i32>} : memref<1x12x2xf32, #tpu.memory_space<vmem>>, vector<1x12x2xf32>,
    } else {
    }
    %cst_94 = arith.constant dense<0.000000e+00> : vector<12xf32>
    %143 = vector.multi_reduction <add>, %135, %cst_94 [1] : vector<12x256xf32> to vector<12xf32>
    %144 = vector.shape_cast %143 : vector<12xf32> to vector<12x1xf32>
    %145 = arith.mulf %135, %135 : vector<12x256xf32>
    %cst_95 = arith.constant dense<0.000000e+00> : vector<12xf32>
    %146 = vector.multi_reduction <add>, %145, %cst_95 [1] : vector<12x256xf32> to vector<12xf32>
    %147 = vector.shape_cast %146 : vector<12xf32> to vector<12x1xf32>
    %c0_96 = arith.constant 0 : index
    %c0_97 = arith.constant 0 : index
    %c0_98 = arith.constant 0 : index
    %148 = vector.load %arg6[%c0_96, %c0_97, %c0_98] : memref<1x12x2xf32, #tpu.memory_space<vmem>>, vector<1x12x2xf32>
    %149 = vector.shape_cast %148 : vector<1x12x2xf32> to vector<12x2xf32>
    %150 = tpu.concatenate %144, %147 in 1 : vector<12x1xf32>, vector<12x1xf32> -> vector<12x2xf32>
    %151 = arith.addf %149, %150 : vector<12x2xf32>
    %c0_99 = arith.constant 0 : index
    %c0_100 = arith.constant 0 : index
    %c0_101 = arith.constant 0 : index
    %152 = vector.load %arg6[%c0_99, %c0_100, %c0_101] : memref<1x12x2xf32, #tpu.memory_space<vmem>>, vector<1x12x2xf32>
    %153 = vector.shape_cast %152 : vector<1x12x2xf32> to vector<12x2xf32>
    %154 = vector.shape_cast %151 : vector<12x2xf32> to vector<1x12x2xf32>
    tpu.vector_store %arg6[%c0_99, %c0_100, %c0_101], %154 {strides = array<i32>} : memref<1x12x2xf32, #tpu.memory_space<vmem>>, vector<1x12x2xf32>,
    return
  }
  func.func @transform_0(%arg0: i32, %arg1: i32) -> (i32, i32, i32, i32) {
    %c0_i32 = arith.constant 0 : i32
    %c0_i32_0 = arith.constant 0 : i32
    %c0_i32_1 = arith.constant 0 : i32
    return %arg0, %arg1, %c0_i32, %c0_i32_0 : i32, i32, i32, i32
  }
  func.func @transform_1(%arg0: i32, %arg1: i32) -> (i32, i32) {
    %c0_i32 = arith.constant 0 : i32
    %c0_i32_0 = arith.constant 0 : i32
    %c0_i32_1 = arith.constant 0 : i32
    return %c0_i32, %c0_i32_0 : i32, i32
  }
  func.func @transform_2(%arg0: i32, %arg1: i32) -> (i32, i32) {
    %c0_i32 = arith.constant 0 : i32
    %c0_i32_0 = arith.constant 0 : i32
    %c0_i32_1 = arith.constant 0 : i32
    return %c0_i32, %c0_i32_0 : i32, i32
  }
  func.func @transform_3(%arg0: i32, %arg1: i32) -> (i32, i32, i32) {
    %c0_i32 = arith.constant 0 : i32
    %c0_i32_0 = arith.constant 0 : i32
    return %arg0, %c0_i32, %arg1 : i32, i32, i32
  }
  func.func @transform_4(%arg0: i32, %arg1: i32) -> (i32, i32, i32) {
    %c0_i32 = arith.constant 0 : i32
    %c0_i32_0 = arith.constant 0 : i32
    %c0_i32_1 = arith.constant 0 : i32
    return %arg0, %c0_i32, %c0_i32_0 : i32, i32, i32
  }
}

</mosaic_0001>

<bundles_post_ra>
// kernel: tpu_custom_call.1
= control target key start
LH: loop header
LB: loop body
LE: loop exit
PB: predicated region body
PF: predicated region fallthrough
CT: control target
= control target key end

     0   :  { %10 = vsyncpa [#allocation4], 0  ;;  %s2654_s0 = inlined_call_operand.hbm [shape: bf16[2,1,4,358], index: 0, kind: input, shape index: {}]   ;;  %s2655_s1 = inlined_call_operand.hbm [shape: bf16[12,196], index: 1, kind: input, shape index: {}]   ;;  %s2656_s2 = inlined_call_operand.hbm [shape: bf16[7,352], index: 2, kind: input, shape index: {}]   ;;  %s2657_s3 = inlined_call_operand.vmem [shape: bf16[2,12,256], index: 3, kind: output, shape index: {0}]   ;;  %s2658_s4 = inlined_call_operand.vmem [shape: f32[2,12,2], index: 4, kind: output, shape index: {1}]  }
   0x1   :  { %12 = vsyncpa [#allocation4 + $0x1], 0 }
   0x2   :  { %13 = vsyncpa [#allocation6], 0  ;;  %s2215_s15 = smov 0   ;;  %s2217_s16 = smov 0  }
   0x3   :  { %s2219_s17 = smov 0   ;;  %s2221_s18 = smov 0  }
   0x4   :  { %s2223_s19 = smov 0   ;;  %s2225_s20 = smov 0  }
   0x5 LB: > { %s1669_s21 = sadd.s32 4294967295, %s2129_s20   ;;  %p1671_p0 = scmp.ge.s32.totalorder %s2129_s20, 1  ;;  %s2129_s20 = sphi %s2225_s20, %s19_s20   ;;  %s2125_s19 = sphi %s2223_s19, %s2666_s19   ;;  %s2121_s18 = sphi %s2221_s18, %s2665_s18   ;;  %s2117_s17 = sphi %s2219_s17, %s2664_s17   ;;  %s2113_s16 = sphi %s2217_s16, %s2663_s16   ;;  %s2109_s15 = sphi %s2215_s15, %s2662_s15  }
   0x6   : > { %p2247_p1 = scmp.eq.s32.totalorder %s1669_s21, 0  ;;  %p160_p2 = scmp.lt.s32.totalorder %s2129_s20, 3 }
   0x7   : > { %s171_s25 = sshll.u32 %s2655_s1, 4  ;;  %s2131_s27 = smov [#allocation5]   ;;  %s172_s25 = int_to_ptr.hbm [resolvable:$true] %s171_s25 }
   0x8   : > { %p2255_p3 = pnand %p1671_p0, %p160_p2  ;;  %s173_s28 = sshll.u32 %s2131_s27, 4  ;;  %s174_s28 = int_to_ptr.vmem [resolvable:$true] %s173_s28 }
   0x9   : > { %s186_s5 = sshll.u32 %s2656_s2, 4  ;;  %s2132_s6 = smov 128   ;;  %s187_s5 = int_to_ptr.hbm [resolvable:$true] %s186_s5 }
   0xa   : > { %p1832_p4 = pneg %p2255_p3  ;;  %s2133_s7 = smov 8  }
   0xb   : > { %s2134_s8 = smov [#allocation7]   ;;  %s31_s10 = sadd.s32 1, %s2125_s19 }
   0xc   : > { %p1833_p5 = pnand %p1832_p4, %p2247_p1  ;;  %s188_s9 = sshll.u32 %s2134_s8, 4  ;;  %s189_s9 = int_to_ptr.vmem [resolvable:$true] %s188_s9 }
   0xd   : > { %s40_s11 = sadd.s32 1, %s2117_s17  ;;  %p33_p6 = scmp.ge.s32.totalorder %s31_s10, 2 }
   0xe   : > { %1835 = dma.hbm_to_vmem [thread:$0]  (!%p1833_p5), %s172_s25, 256, %s174_s28, [#allocation6], %s2132_s6, %s2132_s6, %s2133_s7  }
   0xf   : > { %1838 = dma.hbm_to_vmem [thread:$0]  (!%p1833_p5), %s187_s5, 192, %s189_s9, [#allocation6]  }
  0x10   : > { %p47_p7 = scmp.ne.s32.totalorder %s2117_s17, %s2113_s16  ;;  %p48_p8 = scmp.eq.s32.totalorder %s2129_s20, 0 }
  0x11   : > { %p53_p9 = scmp.ne.s32.totalorder %s2113_s16, %s2109_s15  ;;  %s2668_s10 = smov (%p33_p6, %s31_s10), 0 }
  0x12   : > { %p49_p10 = por %p48_p8, %p47_p7  ;;  %s35_s13 = ssub.s32 %s2125_s19, %s2668_s10 }
  0x13   : > { %p2277_p11 = por %p2247_p1, %p53_p9  ;;  %p1845_p12 = scmp.lt.s32.totalorder %s2129_s20, 2 }
  0x14   : > { %p38_p13 = scmp.eq.s32.totalorder %s35_s13, 0  ;;  %s199_s14 = sand.u32 1, %s2117_s17  }
  0x15   : > { %s1819_s21 = smul.u32 6, %s199_s14  ;;  %p1840_p0 = pnand %p1845_p12, %p49_p10 }
  0x16   : > { %s2286_s23 = scalar_select %p38_p13, %s2117_s17, %s40_s11  }
  0x17   : > { %s1820_s24 = smul.u32 6, %s2125_s19  ;;  %s203_s25 = scalar_lea.vmem [#allocation3], %s1819_s21 }
  0x18   : > { %s214_s27 = sshll.u32 %s203_s25, 4  ;;  %s200_s5 = scalar_lea.sflag [#allocation4], %s199_s14  ;;  %s215_s27 = int_to_ptr.vmem [resolvable:$true] %s214_s27 }
  0x19   : > { %s210_s29 = scalar_lea.hbm %s2654_s0, %s1820_s24  ;;  %223 = sbr.rel (%p2255_p3) target bundleno = 806 (0x326), region = 32 }
  0x1a   : > { %s212_s30 = sshll.u32 %s210_s29, 4  ;;  %s225_s6 = sand.u32 (!%p2255_p3), 1, %s2113_s16   ;;  %s213_s30 = int_to_ptr.hbm [resolvable:$true] %s212_s30 }
  0x1b   : > { %1842 = dma.hbm_to_vmem [thread:$0]  (!%p1840_p0), %s213_s30, 96, %s215_s27, %s200_s5  }
  0x1c   : > { %s1821_s7 = smul.u32 (!%p2255_p3), 6, %s225_s6  ;;  %s226_s8 = scalar_lea.sflag (!%p2255_p3), [#allocation4], %s225_s6 }
  0x1e   : > { %s2295_s9 = scalar_lea.vmem [#allocation3], %s1821_s7 }
  0x1f   : > { %2100 = dma.done.wait (%p2277_p11), %s226_s8, 96  }
  0x20   : > { %2102 = vsyncadd (%p2277_p11), %s226_s8, 4294967200 }
  0x21   : > { %2104 = dma.done.wait (%p2247_p1), [#allocation6], 448  }
  0x22   : > { %2106 = vsyncadd (%p2247_p1), [#allocation6], 4294966848  ;;  %v554_v0 = vld [vmem:[#allocation7] sm:$0x22]  ;;  %v555_v1 = vld [vmem:[#allocation7 + $0x8] sm:$0x2] }
  0x23   : > { %v412_v2 = vld [vmem:[#allocation7] sm:$0x11]  ;;  %v558_v3 = vunpack.c.l.b16 %v554_v0  ;;  %v559_v4 = vunpack.c.h.b16 %v554_v0  ;;  %v560_v5 = vunpack.c.l.b16 %v555_v1  ;;  %v413_v6 = vld [vmem:[#allocation7 + $0x8] sm:$0x1]  ;;  %v835_v8 = vld [vmem:[#allocation7] sm:$0x44] }
  0x24   : > { %v416_v7 = vunpack.c.l.b16 %v412_v2  ;;  %v836_v9 = vld [vmem:[#allocation7 + $0x8] sm:$0x4]  ;;  %vm321_vm0 = vcmask 1043456   ;;  %v417_v10 = vunpack.c.h.b16 %v412_v2  ;;  %v418_v11 = vunpack.c.l.b16 %v413_v6  ;;  %v693_v42 = vld [vmem:[#allocation7] sm:$0x22]  ;;  %s2135_s22 = smov 2  }
  0x25   : > { %v839_v12 = vunpack.c.l.b16 %v835_v8  ;;  %v840_v13 = vunpack.c.h.b16 %v835_v8  ;;  %v561_v14 = vpack.c.b16 %v558_v3, %v558_v3  ;;  %v562_v15 = vpack.c.b16 %v559_v4, %v559_v4  ;;  %v694_v47 = vld [vmem:[#allocation7 + $0x8] sm:$0x2]  ;;  %v292_v56 = vld [vmem:[#allocation7 + $0x8] sm:$0x1]  ;;  %s2136_s26 = smov 4   ;;  %s2137_s11 = smov 1  }
  0x26   : > { %v563_v16 = vpack.c.b16 %v560_v5, %v560_v5  ;;  %v419_v17 = vpack.c.b16 %v416_v7, %v416_v7  ;;  %v420_v18 = vpack.c.b16 %v417_v10, %v417_v10  ;;  %v421_v19 = vpack.c.b16 %v418_v11, %v418_v11  ;;  %v2307_v1 = vld [vmem:[%s2295_s9] sm:$0x3f]  ;;  %s2138_s12 = smov 3   ;;  %s2139_s13 = smov 6  }
  0x27   : > { %v841_v20 = vunpack.c.l.b16 %v836_v9  ;;  %v842_v21 = vpack.c.b16 %v839_v12, %v839_v12  ;;  %v565_v22 = vpack.i.b16 %v561_v14, %v561_v14  ;;  %v569_v23 = vpack.i.b16 %v562_v15, %v562_v15  ;;  %v1116_v9 = vld [vmem:[#allocation7] sm:$0x88]  ;;  %v1117_v10 = vld [vmem:[#allocation7 + $0x8] sm:$0x8]  ;;  %s2140_s14 = smov 64   ;;  %s2141_s21 = smov 96  }
  0x28   : > { %v573_v24 = vpack.i.b16 %v563_v16, %v563_v16  ;;  %v423_v25 = vshrl.u32 %v419_v17, 16  ;;  %v428_v26 = vshrl.u32 %v420_v18, 16  ;;  %v433_v27 = vshrl.u32 %v421_v19, 16  ;;  %s2142_s24 = smov 5   ;;  %s2143_s25 = smov 112  }
  0x29   : > { %v843_v28 = vpack.c.b16 %v840_v13, %v840_v13  ;;  %v844_v29 = vpack.c.b16 %v841_v20, %v841_v20  ;;  %v567_v30 = vperm.slane %v565_v22, 1  ;;  %v571_v31 = vperm.slane %v569_v23, 1  ;;  %v974_v23 = vld [vmem:[#allocation7] sm:$0x44]  ;;  %s2144_s27 = smov 80   ;;  %s2145_s15 = smov 32  }
  0x2a   : > { %v575_v32 = vperm.slane %v573_v24, 1  ;;  %v424_v33 = vpack.i.b16 %v423_v25, %v423_v25  ;;  %v429_v34 = vpack.i.b16 %v428_v26, %v428_v26  ;;  %v434_v35 = vpack.i.b16 %v433_v27, %v433_v27  ;;  %s2146_s28 = smov 48   ;;  %s2147_s29 = smov 79  }
  0x2b   : > { %v846_v36 = vpack.i.b16 %v842_v21, %v842_v21  ;;  %v850_v37 = vpack.i.b16 %v843_v28, %v843_v28  ;;  %v578_v38 = vunpack.c.l.bf16 %v567_v30  ;;  %v579_v39 = vunpack.c.l.bf16 %v571_v31  ;;  %s2148_s30 = smov 63   ;;  %s2149_s5 = smov 111  }
  0x2c   : > { %v580_v40 = vunpack.c.l.bf16 %v575_v32  ;;  %v426_v41 = vperm.slane %v424_v33, 0  ;;  %v431_v43 = vperm.slane %v429_v34, 0  ;;  %v436_v44 = vperm.slane %v434_v35, 0  ;;  %v975_v32 = vld [vmem:[#allocation7 + $0x8] sm:$0x4]  ;;  %s2150_s6 = smov 95  }
  0x2d   : > { %v848_v45 = vperm.slane %v846_v36, 2  ;;  %v852_v46 = vperm.slane %v850_v37, 2  ;;  %v584_v48 = vrot.slane %v579_v39, 4  ;;  %v854_v50 = vpack.i.b16 %v844_v29, %v844_v29  ;;  %s2151_s7 = smov 127   ;;  %s2152_s8 = smov 31  }
  0x2e   : > { %v439_v49 = vunpack.c.l.bf16 %v426_v41  ;;  %v697_v51 = vunpack.c.l.b16 %v693_v42  ;;  %v440_v52 = vunpack.c.l.bf16 %v431_v43  ;;  %v441_v53 = vunpack.c.l.bf16 %v436_v44  ;;  %p275_p1 = scmp.lt.s32.totalorder %s2121_s18, 1 }
  0x2f   : > { %v859_v54 = vunpack.c.l.bf16 %v848_v45  ;;  %v860_v55 = vunpack.c.l.bf16 %v852_v46  ;;  %v585_v57 = vsel %vm321_vm0, %v578_v38, %v584_v48  ;;  %v856_v58 = vperm.slane %v854_v50, 2 }
  0x30   : > { %v698_v59 = vunpack.c.h.b16 %v693_v42  ;;  %v699_v60 = vunpack.c.l.b16 %v694_v47  ;;  %v1955_v61 = vpack.i.bf16 %v580_v40, %v585_v57  ;;  %v445_v62 = vrot.slane %v440_v52, 4  ;;  %s2670_s18 = smov (!%p275_p1, %s2121_s18), 1 }
  0x31   : > { %v865_v63 = vrot.slane %v860_v55, 4  ;;  %v700_v0 = vpack.c.b16 %v697_v51, %v697_v51  ;;  %v861_v2 = vunpack.c.l.bf16 %v856_v58  ;;  %v297_v5 = vunpack.c.l.b16 %v292_v56 }
  0x32   : > { %v701_v3 = vpack.c.b16 %v698_v59, %v698_v59  ;;  %v702_v4 = vpack.c.b16 %v699_v60, %v699_v60  ;;  %1956 = vrot.lane.b32.xlu0 %v1955_v61, %s2135_s22  ;;  %v446_v6 = vsel %vm321_vm0, %v439_v49, %v445_v62  ;;  %v314_v14 = vunpack.c.h.bf16 %v2307_v1  ;;  %s2153_s22 = smov 94  }
  0x33   : > { %v866_v7 = vsel %vm321_vm0, %v859_v54, %v865_v63  ;;  %v704_v8 = vshrl.u32 %v700_v0, 16  ;;  %v1970_v15 = vpack.i.bf16 %v441_v53, %v446_v6  ;;  %v300_v17 = vpack.c.b16 %v297_v5, %v297_v5  ;;  %v291_v53 = vld [vmem:[#allocation7] sm:$0x11] }
  0x34   : > { %v1960_v11 = vpack.i.bf16 %v861_v2, %v866_v7  ;;  %v709_v12 = vshrl.u32 %v701_v3, 16  ;;  %v714_v13 = vshrl.u32 %v702_v4, 16  ;;  %v1120_v18 = vunpack.c.l.b16 %v1116_v9 }
  0x35   : > { %v705_v16 = vpack.i.b16 %v704_v8, %v704_v8  ;;  %v1121_v21 = vunpack.c.h.b16 %v1116_v9  ;;  %v1122_v22 = vunpack.c.l.b16 %v1117_v10  ;;  %v310_v25 = vpack.i.b16 %v300_v17, %v300_v17 }
  0x36   : > { %1961 = vrot.lane.b32.xlu1 %v1960_v11, %s2136_s26  ;;  %v710_v19 = vpack.i.b16 %v709_v12, %v709_v12  ;;  %v715_v20 = vpack.i.b16 %v714_v13, %v714_v13  ;;  %v1123_v26 = vpack.c.b16 %v1120_v18, %v1120_v18  ;;  %v978_v27 = vunpack.c.l.b16 %v974_v23  ;;  %s2154_s26 = smov 62  }
  0x37   : > { %v707_v24 = vperm.slane %v705_v16, 1  ;;  %v1124_v30 = vpack.c.b16 %v1121_v21, %v1121_v21  ;;  %v1125_v31 = vpack.c.b16 %v1122_v22, %v1122_v22  ;;  %v312_v34 = vperm.slane %v310_v25, 0 }
  0x38   : > { %v712_v28 = vperm.slane %v710_v19, 1  ;;  %v717_v29 = vperm.slane %v715_v20, 1  ;;  %v1127_v35 = vpack.i.b16 %v1123_v26, %v1123_v26  ;;  %v979_v36 = vunpack.c.h.b16 %v974_v23 }
  0x39   : > { %v720_v33 = vunpack.c.l.bf16 %v707_v24  ;;  %v1131_v39 = vpack.i.b16 %v1124_v30, %v1124_v30  ;;  %v1135_v40 = vpack.i.b16 %v1125_v31, %v1125_v31  ;;  %v317_v41 = vunpack.c.l.bf16 %v312_v34  ;;  %v411_v34 = vld [vmem:[%s2295_s9] sm:$0x3f] }
  0x3a   : > { %v721_v37 = vunpack.c.l.bf16 %v712_v28  ;;  %v722_v38 = vunpack.c.l.bf16 %v717_v29  ;;  %1971 = vrot.lane.b32.xlu0 %v1970_v15, %s2137_s11  ;;  %v1129_v42 = vperm.slane %v1127_v35, 3  ;;  %v980_v43 = vunpack.c.l.b16 %v975_v32  ;;  %s2155_s11 = smov 78  }
  0x3b   : > { %v981_v44 = vpack.c.b16 %v978_v27, %v978_v27  ;;  %v1133_v46 = vperm.slane %v1131_v39, 3  ;;  %v1137_v47 = vperm.slane %v1135_v40, 3  ;;  %v982_v48 = vpack.c.b16 %v979_v36, %v979_v36 }
  0x3c   : > { %v726_v45 = vrot.slane %v721_v37, 4  ;;  %v325_v49 = vmul.f32 %v317_v41, %v314_v14  ;;  %v1140_v50 = vunpack.c.l.bf16 %v1129_v42  ;;  %v983_v51 = vpack.c.b16 %v980_v43, %v980_v43 }
  0x3d   : > { %v985_v52 = vshrl.u32 %v981_v44, 16  ;;  %v1141_v55 = vunpack.c.l.bf16 %v1133_v46  ;;  %v1142_v56 = vunpack.c.l.bf16 %v1137_v47  ;;  %v990_v57 = vshrl.u32 %v982_v48, 16  ;;  %v553_v47 = vld [vmem:[%s2295_s9] sm:$0x3f] }
  0x3e   : > { %v727_v54 = vsel %vm321_vm0, %v720_v33, %v726_v45  ;;  %330 = vst [vmem:[#allocation1 + $0x10] ss:$2 sm:$0xff] %v325_v49  ;;  %v995_v60 = vshrl.u32 %v983_v51, 16  ;;  %v295_v61 = vunpack.c.l.b16 %v291_v53  ;;  %v296_v0 = vunpack.c.h.b16 %v291_v53 }
  0x3f   : > { %v1975_v58 = vpack.i.bf16 %v722_v38, %v727_v54  ;;  %v986_v59 = vpack.i.b16 %v985_v52, %v985_v52  ;;  %v1146_v62 = vrot.slane %v1141_v55, 4  ;;  %v991_v63 = vpack.i.b16 %v990_v57, %v990_v57  ;;  %v692_v55 = vld [vmem:[%s2295_s9] sm:$0x3f] }
  0x40   : > { %v996_v3 = vpack.i.b16 %v995_v60, %v995_v60  ;;  %v298_v4 = vpack.c.b16 %v295_v61, %v295_v61  ;;  %v299_v7 = vpack.c.b16 %v296_v0, %v296_v0  ;;  %v313_v23 = vunpack.c.l.bf16 %v2307_v1 }
  0x41   : > { %1976 = vrot.lane.b32.xlu1 %v1975_v58, %s2138_s12  ;;  %v988_v2 = vperm.slane %v986_v59, 2  ;;  %v1147_v5 = vsel %vm321_vm0, %v1140_v50, %v1146_v62  ;;  %v993_v6 = vperm.slane %v991_v63, 2  ;;  %vm452_vm1 = vcmask 7168   ;;  %s2157_s12 = smov 110  }
  0x42   : > { %v1965_v8 = vpack.i.bf16 %v1142_v56, %v1147_v5  ;;  %v998_v9 = vperm.slane %v996_v3, 2  ;;  %v302_v10 = vpack.i.b16 %v298_v4, %v298_v4  ;;  %v306_v13 = vpack.i.b16 %v299_v7, %v299_v7 }
  0x43   : > { %v1001_v11 = vunpack.c.l.bf16 %v988_v2  ;;  %v1002_v12 = vunpack.c.l.bf16 %v993_v6  ;;  %v437_v37 = vunpack.c.l.bf16 %v411_v34  ;;  %v438_v38 = vunpack.c.h.bf16 %v411_v34 }
  0x44   : > { %1966 = vrot.lane.b32.xlu2 %v1965_v8, %s2139_s13  ;;  %v1003_v14 = vunpack.c.l.bf16 %v998_v9  ;;  %v304_v15 = vperm.slane %v302_v10, 0  ;;  %v308_v18 = vperm.slane %v306_v13, 0  ;;  %vm591_vm2 = vcmask 15360   ;;  %v834_v9 = vld [vmem:[%s2295_s9] sm:$0x3f]  ;;  %s2158_s13 = smov 77  }
  0x45   : > { %v333_v16 = vld.sshfl [vmem:[#allocation1 + $0x10] sm:$0xff pattern:$0x75316420]  ;;  %v1007_v17 = vrot.slane %v1002_v12, 4  ;;  %v576_v51 = vunpack.c.l.bf16 %v553_v47  ;;  %v577_v52 = vunpack.c.h.bf16 %v553_v47  ;;  %vm733_vm3 = vcmask 23552  }
  0x46   : > { %v338_v19 = vpack.c.bf16 %v333_v16, %v333_v16  ;;  %v315_v21 = vunpack.c.l.bf16 %v304_v15  ;;  %v316_v22 = vunpack.c.l.bf16 %v308_v18  ;;  %v718_v0 = vunpack.c.l.bf16 %v692_v55 }
  0x47   : > { %v1008_v20 = vsel %vm321_vm0, %v1001_v11, %v1007_v17  ;;  %v719_v4 = vunpack.c.h.bf16 %v692_v55  ;;  %vm872_vm4 = vcmask 31744   ;;  %v857_v15 = vunpack.c.l.bf16 %v834_v9 }
  0x48   : > { %358 = vrot.lane.b32.xlu0 %v338_v19, %s2141_s21  ;;  %v1980_v24 = vpack.i.bf16 %v1003_v14, %v1008_v20  ;;  %v320_v25 = vrot.slane %v316_v22, 4  ;;  %v343_v27 = vrot.slane %v338_v19, 6  ;;  %v858_v17 = vunpack.c.h.bf16 %v834_v9 }
  0x49   : > { %380 = vrot.lane.b32.xlu1 %v338_v19, %s2140_s14  ;;  %vm1014_vm5 = vcmask 39936   ;;  %vm1153_vm6 = vcmask 48128   ;;  %vm363_vm7 = vcmask 785408   ;;  %vm385_vm8 = vcmask 523264  }
  0x4a   : > { %v322_v26 = vsel %vm321_vm0, %v315_v21, %v320_v25  ;;  %vm374_vm9 = vcmask 654336   ;;  %vm352_vm10 = vcmask 916480   ;;  %vm396_vm11 = vcmask 392192  }
  0x4b   : > { %v324_v28 = vmul.f32 %v322_v26, %v313_v23  ;;  %vm407_vm12 = vcmask 261120   ;;  %vm516_vm13 = vcmask 646144   ;;  %vm494_vm14 = vcmask 908288  }
  0x4c   : > { %1981 = vrot.lane.b32.xlu2 %v1980_v24, %s2142_s24  ;;  %s2161_s24 = smov 93   ;;  %vm527_vm15 = vcmask 515072  }
  0x4d   : > { %328 = vst [vmem:[#allocation1] ss:$2 sm:$0xff] %v324_v28  ;;  %v973_v28 = vld [vmem:[%s2295_s9] sm:$0x3f] }
  0x51   : > { %346 = vrot.lane.b32.xlu1 %v343_v27, %s2143_s25 }
  0x54   : > { %369 = vrot.lane.b32.xlu2 %v343_v27, %s2144_s27  ;;  %v331_v29 = vld.sshfl [vmem:[#allocation1] sm:$0xff pattern:$0x75316420]  ;;  %v332_v30 = vld.sshfl [vmem:[#allocation1 + $0x8] sm:$0xff pattern:$0x75316420] }
  0x55   : > { %v337_v31 = vpack.c.bf16 %v332_v30, %v331_v29 }
  0x57   : > { %378 = vrot.lane.b32.xlu0 %v337_v31, %s2140_s14  ;;  %339 = vst [vmem:[#allocation2] sm:$0x33] %v337_v31  ;;  %v342_v1 = vrot.slane %v337_v31, 6  ;;  %s2159_s14 = smov 61  }
  0x59   : > { %367 = vrot.lane.b32.xlu1 %v342_v1, %s2144_s27  ;;  %s2163_s27 = smov 92  }
  0x5c   : > { %356 = vrot.lane.b32.xlu2 %v337_v31, %s2141_s21  ;;  %s2160_s21 = smov 109  }
  0x5f   : > { %344 = vrot.lane.b32.xlu0 %v342_v1, %s2143_s25  ;;  %s2162_s25 = smov 29  }
  0x61   : > { %400 = vrot.lane.b32.xlu1 %v337_v31, %s2145_s15  ;;  %v999_v31 = vunpack.c.l.bf16 %v973_v28 }
  0x64   : > { %389 = vrot.lane.b32.xlu2 %v342_v1, %s2146_s28  ;;  %v1000_v1 = vunpack.c.h.bf16 %v973_v28 }
  0x67   : > { %391 = vrot.lane.b32.xlu0 %v343_v27, %s2146_s28  ;;  %s2165_s28 = smov 108  }
  0x6c   : > { %402 = vrot.lane.b32.xlu2 %v338_v19, %s2145_s15  ;;  %s2164_s15 = smov 28  }
  0x9e   : > { %v1967_v22 = vpop.permute.xlu2 %1966 }
  0xa4   : > { %v1957_v32 = vpop.permute.xlu0 %1956 }
  0xa5   : > { %v1958_v39 = vunpack.i.l.bf16 %v1957_v32  ;;  %v1959_v50 = vunpack.i.h.bf16 %v1957_v32 }
  0xa6   : > { %v1982_v27 = vpop.permute.xlu2 %1981 }
  0xa7   : > { %v590_v48 = vrot.slane %v1958_v39, 4  ;;  %v1984_v29 = vunpack.i.h.bf16 %v1982_v27  ;;  %v1983_v30 = vunpack.i.l.bf16 %v1982_v27 }
  0xa8   : > { %v2317_v33 = vpop.permute.xlu1 %1961 }
  0xa9   : > { %v592_v53 = vsel %vm591_vm2, %v590_v48, %v1958_v39  ;;  %v593_v54 = vsel %vm591_vm2, %v590_v48, %v1959_v50  ;;  %v1963_v3 = vunpack.i.l.bf16 %v2317_v33  ;;  %v1964_v12 = vunpack.i.h.bf16 %v2317_v33 }
  0xaa   : > { %v596_v57 = vmul.f32 %v592_v53, %v576_v51  ;;  %v597_v59 = vmul.f32 %v593_v54, %v577_v52  ;;  %v1013_v32 = vrot.slane %v1983_v30, 4 }
  0xab   : > { %v871_v10 = vrot.slane %v1963_v3, 4 }
  0xac   : > { %v1972_v35 = vpop.permute.xlu0 %1971  ;;  %v1015_v33 = vsel %vm1014_vm5, %v1013_v32, %v1983_v30  ;;  %v1016_v34 = vsel %vm1014_vm5, %v1013_v32, %v1984_v29  ;;  %vm666_vm5 = vcmask 506880  }
  0xad   : > { %v1973_v36 = vunpack.i.l.bf16 %v1972_v35  ;;  %v1974_v40 = vunpack.i.h.bf16 %v1972_v35  ;;  %v873_v18 = vsel %vm872_vm4, %v871_v10, %v1963_v3  ;;  %v874_v19 = vsel %vm872_vm4, %v871_v10, %v1964_v12 }
  0xae   : > { %v877_v20 = vmul.f32 %v873_v18, %v857_v15  ;;  %v878_v21 = vmul.f32 %v874_v19, %v858_v17  ;;  %vm505_vm4 = vcmask 777216  }
  0xaf   : > { %v451_v41 = vrot.slane %v1973_v36, 4 }
  0xb1   : > { %v453_v42 = vsel %vm452_vm1, %v451_v41, %v1973_v36  ;;  %v454_v43 = vsel %vm452_vm1, %v451_v41, %v1974_v40  ;;  %v1019_v36 = vmul.f32 %v1015_v33, %v999_v31  ;;  %v1968_v40 = vunpack.i.l.bf16 %v1967_v22  ;;  %v2364_v41 = vpop.permute.xlu2 %369 }
  0xb2   : > { %v457_v44 = vmul.f32 %v453_v42, %v437_v37  ;;  %v458_v45 = vmul.f32 %v454_v43, %v438_v38  ;;  %v1020_v37 = vmul.f32 %v1016_v34, %v1000_v1  ;;  %v372_v12 = vrot.slane %v2364_v41, 4 }
  0xb3   : > { %v1977_v46 = vpop.permute.xlu1 %1976 }
  0xb4   : > { %461 = vst [vmem:[#allocation1] ss:$2 sm:$0xff] %v457_v44  ;;  %v1978_v49 = vunpack.i.l.bf16 %v1977_v46  ;;  %v1979_v58 = vunpack.i.h.bf16 %v1977_v46  ;;  %v1115_v44 = vld [vmem:[%s2295_s9] sm:$0x3f]  ;;  %v1969_v46 = vunpack.i.h.bf16 %v1967_v22  ;;  %s2156_s9 = smov 30  }
  0xb5   : > { %463 = vst [vmem:[#allocation1 + $0x10] ss:$2 sm:$0xff] %v458_v45  ;;  %v1152_v45 = vrot.slane %v1968_v40, 4  ;;  %v1139_v50 = vunpack.c.h.bf16 %v1115_v44 }
  0xb6   : > { %v732_v56 = vrot.slane %v1978_v49, 4 }
  0xb7   : > { %v1154_v51 = vsel %vm1153_vm6, %v1152_v45, %v1968_v40  ;;  %v1155_v54 = vsel %vm1153_vm6, %v1152_v45, %v1969_v46  ;;  %vm644_vm6 = vcmask 769024  }
  0xb8   : > { %v734_v5 = vsel %vm733_vm3, %v732_v56, %v1978_v49  ;;  %v735_v6 = vsel %vm733_vm3, %v732_v56, %v1979_v58  ;;  %v1138_v49 = vunpack.c.l.bf16 %v1115_v44  ;;  %vm549_vm3 = vcmask 252928  }
  0xb9   : > { %v738_v8 = vmul.f32 %v734_v5, %v718_v0  ;;  %v739_v11 = vmul.f32 %v735_v6, %v719_v4  ;;  %v357_v52 = vpop.permute.xlu2 %356 }
  0xba   : > { %v359_v53 = vpop.permute.xlu0 %358  ;;  %v360_v55 = vrot.slane %v357_v52, 4 }
  0xbb   : > { %v464_v60 = vld.sshfl [vmem:[#allocation1] sm:$0xff pattern:$0x75316420]  ;;  %v465_v61 = vld.sshfl [vmem:[#allocation1 + $0x8] sm:$0xff pattern:$0x75316420]  ;;  %v381_v48 = vpop.permute.xlu1 %380 }
  0xbc   : > { %v466_v62 = vld.sshfl [vmem:[#allocation1 + $0x10] sm:$0xff pattern:$0x75316420]  ;;  %v2326_v63 = vpack.c.bf16 %v465_v61, %v464_v60  ;;  %600 = vst [vmem:[#allocation1] ss:$2 sm:$0xff] %v596_v57  ;;  %v361_v56 = vrot.slane %v359_v53, 4  ;;  %v1158_v57 = vmul.f32 %v1154_v51, %v1138_v49 }
  0xbd   : > { %v2328_v2 = vpack.c.bf16 %v466_v62, %v466_v62  ;;  %602 = vst [vmem:[#allocation1 + $0x10] ss:$2 sm:$0xff] %v597_v59  ;;  %v1159_v59 = vmul.f32 %v1155_v54, %v1139_v50  ;;  %v383_v5 = vrot.slane %v381_v48, 4 }
  0xbe   : > { %509 = vrot.lane.b32.xlu0 %v2326_v63, %s2147_s29  ;;  %v474_v25 = vrot.slane %v2326_v63, 6  ;;  %v362_v58 = vsel %vm321_vm0, %v360_v55, %v361_v56 }
  0xbf   : > { %511 = vrot.lane.b32.xlu1 %v2328_v2, %s2147_s29  ;;  %v2336_v7 = vrot.slane %v2328_v2, 6  ;;  %v364_v60 = vsel %vm363_vm7, %v357_v52, %v362_v58  ;;  %s2166_s29 = smov 76   ;;  %vm688_vm7 = vcmask 244736  }
  0xc0   : > { %366 = vst [vmem:[#allocation2 + $0x38] sm:$0x33] %v364_v60 }
  0xc1   : > { %522 = vrot.lane.b32.xlu2 %v2336_v7, %s2148_s30 }
  0xc3   : > { %v603_v13 = vld.sshfl [vmem:[#allocation1] sm:$0xff pattern:$0x75316420]  ;;  %v604_v14 = vld.sshfl [vmem:[#allocation1 + $0x8] sm:$0xff pattern:$0x75316420]  ;;  %v347_v0 = vpop.permute.xlu1 %346 }
  0xc4   : > { %742 = vst [vmem:[#allocation1] ss:$2 sm:$0xff] %v738_v8  ;;  %v605_v16 = vld.sshfl [vmem:[#allocation1 + $0x10] sm:$0xff pattern:$0x75316420]  ;;  %v2356_v35 = vpack.c.bf16 %v604_v14, %v603_v13  ;;  %v349_v13 = vrot.slane %v347_v0, 4 }
  0xc5   : > { %744 = vst [vmem:[#allocation1 + $0x10] ss:$2 sm:$0xff] %v739_v11  ;;  %v2368_v43 = vpack.c.bf16 %v605_v16, %v605_v16 }
  0xc6   : > { %487 = vrot.lane.b32.xlu0 %v2326_v63, %s2149_s5  ;;  %v2374_v47 = vrot.slane %v2356_v35, 6 }
  0xc7   : > { %489 = vrot.lane.b32.xlu1 %v2328_v2, %s2149_s5  ;;  %v2382_v61 = vrot.slane %v2368_v43, 6  ;;  %s2168_s5 = smov 107  }
  0xc9   : > { %500 = vrot.lane.b32.xlu2 %v2336_v7, %s2150_s6  ;;  %v379_v6 = vpop.permute.xlu0 %378 }
  0xca   : > { %v382_v8 = vrot.slane %v379_v6, 4 }
  0xcb   : > { %v2345_v23 = vld.sshfl [vmem:[#allocation1] sm:$0xff pattern:$0x75316420]  ;;  %v2347_v24 = vld.sshfl [vmem:[#allocation1 + $0x8] sm:$0xff pattern:$0x75316420]  ;;  %v368_v14 = vpop.permute.xlu1 %367 }
  0xcc   : > { %v2350_v26 = vld.sshfl [vmem:[#allocation1 + $0x10] sm:$0xff pattern:$0x75316420]  ;;  %881 = vst [vmem:[#allocation1] ss:$2 sm:$0xff] %v877_v20  ;;  %v384_v9 = vsel %vm321_vm0, %v382_v8, %v383_v5  ;;  %v371_v15 = vrot.slane %v368_v14, 4  ;;  %v2403_v17 = vpack.c.bf16 %v2347_v24, %v2345_v23  ;;  %v390_v23 = vpop.permute.xlu2 %389 }
  0xcd   : > { %883 = vst [vmem:[#allocation1 + $0x10] ss:$2 sm:$0xff] %v878_v21  ;;  %v2395_v10 = vpack.c.bf16 %v2350_v26, %v2350_v26  ;;  %v386_v11 = vsel %vm385_vm8, %v379_v6, %v384_v9  ;;  %v393_v24 = vrot.slane %v390_v23, 4  ;;  %vm633_vm8 = vcmask 900096  }
  0xce   : > { %476 = vrot.lane.b32.xlu0 %v474_v25, %s2151_s7  ;;  %388 = vst [vmem:[#allocation2 + $0x70] sm:$0x33] %v386_v11  ;;  %v373_v19 = vsel %vm321_vm0, %v371_v15, %v372_v12 }
  0xcf   : > { %520 = vrot.lane.b32.xlu1 %v474_v25, %s2148_s30  ;;  %v375_v20 = vsel %vm374_vm9, %v368_v14, %v373_v19  ;;  %v2417_v28 = vrot.slane %v2395_v10, 6  ;;  %s2167_s30 = smov 75   ;;  %vm655_vm9 = vcmask 637952  }
  0xd0   : > { %377 = vst [vmem:[#allocation2 + $0x50] sm:$0xcc] %v375_v20 }
  0xd1   : > { %542 = vrot.lane.b32.xlu2 %v474_v25, %s2152_s8  ;;  %v345_v16 = vpop.permute.xlu0 %344 }
  0xd2   : > { %v348_v18 = vrot.slane %v345_v16, 4 }
  0xd3   : > { %v2360_v39 = vld.sshfl [vmem:[#allocation1] sm:$0xff pattern:$0x75316420]  ;;  %v2366_v42 = vld.sshfl [vmem:[#allocation1 + $0x8] sm:$0xff pattern:$0x75316420]  ;;  %v401_v32 = vpop.permute.xlu1 %400 }
  0xd4   : > { %v2358_v38 = vld.sshfl [vmem:[#allocation1 + $0x10] sm:$0xff pattern:$0x75316420]  ;;  %1023 = vst [vmem:[#allocation1] ss:$2 sm:$0xff] %v1019_v36  ;;  %v351_v21 = vsel %vm321_vm0, %v348_v18, %v349_v13  ;;  %v403_v31 = vpop.permute.xlu2 %402  ;;  %v404_v33 = vrot.slane %v401_v32, 4  ;;  %v2434_v40 = vpack.c.bf16 %v2366_v42, %v2360_v39 }
  0xd5   : > { %1025 = vst [vmem:[#allocation1 + $0x10] ss:$2 sm:$0xff] %v1020_v37  ;;  %v353_v22 = vsel %vm352_vm10, %v345_v16, %v351_v21  ;;  %v405_v1 = vrot.slane %v403_v31, 4  ;;  %v2427_v37 = vpack.c.bf16 %v2358_v38, %v2358_v38  ;;  %vm797_vm10 = vcmask 629760  }
  0xd6   : > { %544 = vrot.lane.b32.xlu0 %v2336_v7, %s2152_s8  ;;  %355 = vst [vmem:[#allocation2 + $0x18] sm:$0xcc] %v353_v22  ;;  %v2439_v41 = vrot.slane %v2434_v40, 6  ;;  %s2170_s8 = smov 91  }
  0xd7   : > { %498 = vrot.lane.b32.xlu1 %v474_v25, %s2150_s6  ;;  %v2411_v25 = vrot.slane %v2403_v17, 6  ;;  %v406_v34 = vsel %vm321_vm0, %v404_v33, %v405_v1  ;;  %v2443_v44 = vrot.slane %v2427_v37, 6  ;;  %s2169_s6 = smov 43  }
  0xd8   : > { %v408_v36 = vsel %vm407_vm12, %v401_v32, %v406_v34  ;;  %vm808_vm12 = vcmask 498688  }
  0xd9   : > { %637 = vrot.lane.b32.xlu2 %v2356_v35, %s2153_s22  ;;  %v392_v26 = vpop.permute.xlu0 %391  ;;  %410 = vst [vmem:[#allocation2 + $0xa8] sm:$0x33] %v408_v36 }
  0xda   : > { %v394_v27 = vrot.slane %v392_v26, 4 }
  0xdb   : > { %v2384_v62 = vld.sshfl [vmem:[#allocation1] sm:$0xff pattern:$0x75316420]  ;;  %v2387_v3 = vld.sshfl [vmem:[#allocation1 + $0x8] sm:$0xff pattern:$0x75316420] }
  0xdc   : > { %v2389_v4 = vld.sshfl [vmem:[#allocation1 + $0x10] sm:$0xff pattern:$0x75316420]  ;;  %1162 = vst [vmem:[#allocation1] ss:$2 sm:$0xff] %v1158_v57  ;;  %v395_v29 = vsel %vm321_vm0, %v393_v24, %v394_v27  ;;  %v1032_v39 = vpack.c.bf16 %v2387_v3, %v2384_v62 }
  0xdd   : > { %1164 = vst [vmem:[#allocation1 + $0x10] ss:$2 sm:$0xff] %v1159_v59  ;;  %v397_v30 = vsel %vm396_vm11, %v390_v23, %v395_v29  ;;  %v1033_v45 = vpack.c.bf16 %v2389_v4, %v2389_v4  ;;  %vm775_vm11 = vcmask 891904  }
  0xde   : > { %659 = vrot.lane.b32.xlu0 %v2356_v35, %s2154_s26  ;;  %399 = vst [vmem:[#allocation2 + $0x88] sm:$0xcc] %v397_v30  ;;  %v2456_v48 = vrot.slane %v1032_v39, 6 }
  0xdf   : > { %661 = vrot.lane.b32.xlu1 %v2368_v43, %s2154_s26  ;;  %s2172_s26 = smov 27   ;;  %v2469_v6 = vrot.slane %v1033_v45, 6 }
  0xe1   : > { %648 = vrot.lane.b32.xlu2 %v2374_v47, %s2155_s11 }
  0xe3   : > { %v1165_v52 = vld.sshfl [vmem:[#allocation1] sm:$0xff pattern:$0x75316420]  ;;  %v1166_v54 = vld.sshfl [vmem:[#allocation1 + $0x8] sm:$0xff pattern:$0x75316420] }
  0xe4   : > { %v2462_v58 = vpack.c.bf16 %v1166_v54, %v1165_v52  ;;  %v1167_v3 = vld.sshfl [vmem:[#allocation1 + $0x10] sm:$0xff pattern:$0x75316420] }
  0xe5   : > { %v2471_v9 = vpack.c.bf16 %v1167_v3, %v1167_v3 }
  0xe6   : > { %639 = vrot.lane.b32.xlu0 %v2368_v43, %s2153_s22  ;;  %s2171_s22 = smov 90   ;;  %v1186_v19 = vrot.slane %v2462_v58, 6 }
  0xe7   : > { %683 = vrot.lane.b32.xlu1 %v2368_v43, %s2156_s9  ;;  %v1187_v20 = vrot.slane %v2471_v9, 6 }
  0xe9   : > { %628 = vrot.lane.b32.xlu2 %v2382_v61, %s2157_s12 }
  0xee   : > { %681 = vrot.lane.b32.xlu0 %v2356_v35, %s2156_s9  ;;  %s2174_s9 = smov 74  }
  0xef   : > { %626 = vrot.lane.b32.xlu1 %v2374_v47, %s2157_s12  ;;  %s2175_s12 = smov 106  }
  0xf1   : > { %792 = vrot.lane.b32.xlu2 %v2395_v10, %s2158_s13 }
  0xf6   : > { %650 = vrot.lane.b32.xlu0 %v2382_v61, %s2155_s11  ;;  %s2173_s11 = smov 26  }
  0xf7   : > { %790 = vrot.lane.b32.xlu1 %v2403_v17, %s2158_s13  ;;  %s2176_s13 = smov 42  }
  0xf9   : > { %801 = vrot.lane.b32.xlu2 %v2411_v25, %s2159_s14 }
  0xfe   : > { %768 = vrot.lane.b32.xlu0 %v2403_v17, %s2160_s21 }
  0xff   : > { %770 = vrot.lane.b32.xlu1 %v2395_v10, %s2160_s21  ;;  %s2178_s21 = smov 46  }
 0x101   : > { %781 = vrot.lane.b32.xlu2 %v2417_v28, %s2161_s24 }
 0x106   : > { %803 = vrot.lane.b32.xlu0 %v2417_v28, %s2159_s14  ;;  %s2177_s14 = smov 47  }
 0x107   : > { %779 = vrot.lane.b32.xlu1 %v2411_v25, %s2161_s24  ;;  %s2179_s24 = smov 45  }
 0x109   : > { %823 = vrot.lane.b32.xlu2 %v2411_v25, %s2162_s25 }
 0x10e   : > { %825 = vrot.lane.b32.xlu0 %v2417_v28, %s2162_s25  ;;  %s2180_s25 = smov 124  }
 0x10f   : > { %920 = vrot.lane.b32.xlu1 %v2427_v37, %s2163_s27 }
 0x111   : > { %964 = vrot.lane.b32.xlu2 %v2427_v37, %s2164_s15 }
 0x116   : > { %918 = vrot.lane.b32.xlu0 %v2434_v40, %s2163_s27  ;;  %s2181_s27 = smov 44  }
 0x117   : > { %962 = vrot.lane.b32.xlu1 %v2434_v40, %s2164_s15  ;;  %s2182_s15 = smov 123  }
 0x119   : > { %907 = vrot.lane.b32.xlu2 %v2439_v41, %s2165_s28 }
 0x11b   : > { %v523_v38 = vpop.permute.xlu2 %522 }
 0x11c   : > { %v525_v13 = vrot.slane %v523_v38, 4 }
 0x11e   : > { %929 = vrot.lane.b32.xlu0 %v2439_v41, %s2166_s29 }
 0x11f   : > { %931 = vrot.lane.b32.xlu1 %v2443_v44, %s2166_s29  ;;  %s2184_s29 = smov 126  }
 0x121   : > { %1071 = vrot.lane.b32.xlu2 %v1032_v39, %s2167_s30 }
 0x123   : > { %v2449_v42 = vpop.permute.xlu2 %500 }
 0x124   : > { %v503_v26 = vrot.slane %v2449_v42, 4 }
 0x126   : > { %909 = vrot.lane.b32.xlu0 %v2443_v44, %s2165_s28  ;;  %s2183_s28 = smov 122  }
 0x127   : > { %1051 = vrot.lane.b32.xlu1 %v1033_v45, %s2168_s5 }
 0x129   : > { %1095 = vrot.lane.b32.xlu2 %v1033_v45, %s2169_s6 }
 0x12b   : > { %v2454_v46 = vpop.permute.xlu2 %542 }
 0x12c   : > { %v546_v22 = vrot.slane %v2454_v46, 4 }
 0x12e   : > { %1073 = vrot.lane.b32.xlu0 %v1033_v45, %s2167_s30  ;;  %s2186_s30 = smov 60  }
 0x12f   : > { %1093 = vrot.lane.b32.xlu1 %v1032_v39, %s2169_s6  ;;  %s2188_s6 = smov 58  }
 0x130   : > { %v510_v49 = vpop.permute.xlu0 %509 }
 0x131   : > { %1060 = vrot.lane.b32.xlu2 %v2456_v48, %s2170_s8  ;;  %v512_v50 = vpop.permute.xlu1 %511  ;;  %v513_v51 = vrot.slane %v510_v49, 4 }
 0x132   : > { %v514_v53 = vrot.slane %v512_v50, 4 }
 0x133   : > { %v2459_v55 = vpop.permute.xlu2 %637 }
 0x134   : > { %v515_v56 = vsel %vm321_vm0, %v513_v51, %v514_v53 }
 0x135   : > { %v517_v57 = vsel %vm516_vm13, %v510_v49, %v515_v56  ;;  %v641_v49 = vrot.slane %v2459_v55, 4  ;;  %vm786_vm13 = vcmask 760832  }
 0x136   : > { %519 = vst [vmem:[#allocation2 + $0x58] sm:$0x33] %v517_v57  ;;  %1049 = vrot.lane.b32.xlu0 %v1032_v39, %s2168_s5  ;;  %s2187_s5 = smov 59  }
 0x137   : > { %1199 = vrot.lane.b32.xlu1 %v2462_v58, %s2171_s22 }
 0x138   : > { %v488_v59 = vpop.permute.xlu0 %487 }
 0x139   : > { %1104 = vrot.lane.b32.xlu2 %v2456_v48, %s2172_s26  ;;  %v490_v60 = vpop.permute.xlu1 %489  ;;  %v491_v62 = vrot.slane %v488_v59, 4 }
 0x13a   : > { %v492_v0 = vrot.slane %v490_v60, 4 }
 0x13b   : > { %v2466_v4 = vpop.permute.xlu2 %648 }
 0x13c   : > { %v493_v5 = vsel %vm321_vm0, %v491_v62, %v492_v0 }
 0x13d   : > { %v495_v8 = vsel %vm494_vm14, %v488_v59, %v493_v5  ;;  %vm830_vm14 = vcmask 236544  }
 0x13e   : > { %497 = vst [vmem:[#allocation2 + $0x20] sm:$0x33] %v495_v8  ;;  %1062 = vrot.lane.b32.xlu0 %v2469_v6, %s2170_s8  ;;  %s1791_s8 = sshll.u32 %s2670_s18, 4 }
 0x13f   : > { %1245 = vrot.lane.b32.xlu1 %v2471_v9, %s2173_s11 }
 0x140   : > { %v2476_v11 = vpop.permute.xlu0 %476 }
 0x141   : > { %1201 = vrot.lane.b32.xlu2 %v2471_v9, %s2171_s22  ;;  %v521_v12 = vpop.permute.xlu1 %520 }
 0x142   : > { %v524_v14 = vrot.slane %v521_v12, 4 }
 0x143   : > { %v2479_v15 = vpop.permute.xlu2 %628 }
 0x144   : > { %v526_v16 = vsel %vm321_vm0, %v524_v14, %v525_v13  ;;  %v631_v60 = vrot.slane %v2479_v15, 4 }
 0x145   : > { %v528_v18 = vsel %vm527_vm15, %v521_v12, %v526_v16  ;;  %vm925_vm15 = vcmask 752640  }
 0x146   : > { %530 = vst [vmem:[#allocation2 + $0x70] sm:$0xcc] %v528_v18  ;;  %1106 = vrot.lane.b32.xlu0 %v2469_v6, %s2172_s26 }
 0x147   : > { %1210 = vrot.lane.b32.xlu1 %v1186_v19, %s2174_s9 }
 0x148   : > { %v545_v21 = vpop.permute.xlu0 %544 }
 0x149   : > { %1212 = vrot.lane.b32.xlu2 %v1187_v20, %s2174_s9  ;;  %v499_v23 = vpop.permute.xlu1 %498  ;;  %v547_v24 = vrot.slane %v545_v21, 4 }
 0x14a   : > { %v502_v27 = vrot.slane %v499_v23, 4 }
 0x14b   : > { %v548_v29 = vsel %vm321_vm0, %v546_v22, %v547_v24  ;;  %v2488_v30 = vpop.permute.xlu2 %792 }
 0x14c   : > { %v504_v31 = vsel %vm321_vm0, %v502_v27, %v503_v26  ;;  %v550_v1 = vsel %vm549_vm3, %v2454_v46, %v548_v29  ;;  %v795_v13 = vrot.slane %v2488_v30, 4  ;;  %vm969_vm3 = vcmask 228352  }
 0x14d   : > { %v506_v32 = vsel %vm505_vm4, %v499_v23, %v504_v31  ;;  %552 = vst [vmem:[#allocation2 + $0xa8] sm:$0xcc] %v550_v1  ;;  %vm936_vm4 = vcmask 621568  }
 0x14e   : > { %508 = vst [vmem:[#allocation2 + $0x38] sm:$0xcc] %v506_v32  ;;  %1243 = vrot.lane.b32.xlu0 %v2462_v58, %s2173_s11  ;;  %s282_s11 = scalar_lea.vmem %s2657_s3, %s1791_s8 }
 0x14f   : > { %1188 = vrot.lane.b32.xlu1 %v1186_v19, %s2175_s12 }
 0x150   : > { %v660_v33 = vpop.permute.xlu0 %659 }
 0x151   : > { %1190 = vrot.lane.b32.xlu2 %v1187_v20, %s2175_s12  ;;  %v662_v34 = vpop.permute.xlu1 %661  ;;  %v663_v36 = vrot.slane %v660_v33, 4 }
 0x152   : > { %v664_v38 = vrot.slane %v662_v34, 4 }
 0x153   : > { %v2494_v39 = vpop.permute.xlu2 %801 }
 0x154   : > { %v665_v42 = vsel %vm321_vm0, %v663_v36, %v664_v38 }
 0x155   : > { %v667_v45 = vsel %vm666_vm5, %v660_v33, %v665_v42  ;;  %vm914_vm5 = vcmask 883712  }
 0x156   : > { %669 = vst [vmem:[#allocation2 + $0x78] sm:$0x33] %v667_v45  ;;  %1232 = vrot.lane.b32.xlu0 %v1186_v19, %s2176_s13 }
 0x157   : > { %1234 = vrot.lane.b32.xlu1 %v1187_v20, %s2176_s13  ;;  %s288_s13 = scalar_lea.vmem %s2658_s4, %s1791_s8 }
 0x158   : > { %v640_v46 = vpop.permute.xlu0 %639 }
 0x159   : > { %531 = vrot.lane.b32.xlu2 %v2326_v63, %s2177_s14  ;;  %v684_v50 = vpop.permute.xlu1 %683  ;;  %v642_v51 = vrot.slane %v640_v46, 4 }
 0x15a   : > { %v686_v57 = vrot.slane %v684_v50, 4 }
 0x15b   : > { %v643_v52 = vsel %vm321_vm0, %v641_v49, %v642_v51  ;;  %v2500_v53 = vpop.permute.xlu2 %781  ;;  %v1749_v49 = vld [vmem:[#allocation2 + $0x70] sm:$0xf] }
 0x15c   : > { %v645_v54 = vsel %vm644_vm6, %v2459_v55, %v643_v52  ;;  %v784_v29 = vrot.slane %v2500_v53, 4  ;;  %v1809_v52 = vld [vmem:[#allocation2 + $0x74] sm:$0xf]  ;;  %vm1078_vm6 = vcmask 613376  }
 0x15d   : > { %647 = vst [vmem:[#allocation2 + $0x40] sm:$0x33] %v645_v54 }
 0x15e   : > { %533 = vrot.lane.b32.xlu0 %v2328_v2, %s2177_s14 }
 0x15f   : > { %670 = vrot.lane.b32.xlu1 %v2374_v47, %s2178_s21 }
 0x160   : > { %v682_v56 = vpop.permute.xlu0 %681 }
 0x161   : > { %672 = vrot.lane.b32.xlu2 %v2382_v61, %s2178_s21  ;;  %v627_v63 = vpop.permute.xlu1 %626  ;;  %v685_v59 = vrot.slane %v682_v56, 4  ;;  %v652_v61 = vrot.slane %v2466_v4, 4 }
 0x162   : > { %v630_v62 = vrot.slane %v627_v63, 4 }
 0x163   : > { %v687_v0 = vsel %vm321_vm0, %v685_v59, %v686_v57  ;;  %v2508_v55 = vpop.permute.xlu2 %823 }
 0x164   : > { %v632_v2 = vsel %vm321_vm0, %v630_v62, %v631_v60  ;;  %v689_v3 = vsel %vm688_vm7, %v682_v56, %v687_v0  ;;  %v827_v38 = vrot.slane %v2508_v55, 4  ;;  %vm1100_vm7 = vcmask 351232  }
 0x165   : > { %v634_v5 = vsel %vm633_vm8, %v627_v63, %v632_v2  ;;  %691 = vst [vmem:[#allocation2 + $0xb0] sm:$0x33] %v689_v3  ;;  %vm1056_vm8 = vcmask 875520  }
 0x166   : > { %636 = vst [vmem:[#allocation2 + $0x20] sm:$0xcc] %v634_v5  ;;  %812 = vrot.lane.b32.xlu0 %v2403_v17, %s2179_s24 }
 0x167   : > { %814 = vrot.lane.b32.xlu1 %v2395_v10, %s2179_s24 }
 0x168   : > { %v651_v47 = vpop.permute.xlu0 %650 }
 0x169   : > { %894 = vrot.lane.b32.xlu2 %v2434_v40, %s2180_s25  ;;  %v791_v8 = vpop.permute.xlu1 %790  ;;  %v653_v12 = vrot.slane %v651_v47, 4 }
 0x16a   : > { %v794_v14 = vrot.slane %v791_v8, 4 }
 0x16b   : > { %v654_v15 = vsel %vm321_vm0, %v652_v61, %v653_v12  ;;  %v2517_v16 = vpop.permute.xlu2 %964 }
 0x16c   : > { %v796_v17 = vsel %vm321_vm0, %v794_v14, %v795_v13  ;;  %v656_v10 = vsel %vm655_vm9, %v2466_v4, %v654_v15  ;;  %v967_v59 = vrot.slane %v2517_v16, 4  ;;  %vm1206_vm9 = vcmask 736256  }
 0x16d   : > { %v798_v18 = vsel %vm797_vm10, %v791_v8, %v796_v17  ;;  %658 = vst [vmem:[#allocation2 + $0x58] sm:$0xcc] %v656_v10  ;;  %vm1067_vm10 = vcmask 744448  }
 0x16e   : > { %800 = vst [vmem:[#allocation2 + $0x60] sm:$0x33] %v798_v18  ;;  %896 = vrot.lane.b32.xlu0 %v2427_v37, %s2180_s25 }
 0x16f   : > { %951 = vrot.lane.b32.xlu1 %v2439_v41, %s2181_s27  ;;  %v805_v41 = vrot.slane %v2494_v39, 4 }
 0x170   : > { %v769_v19 = vpop.permute.xlu0 %768 }
 0x171   : > { %953 = vrot.lane.b32.xlu2 %v2443_v44, %s2181_s27  ;;  %v771_v20 = vpop.permute.xlu1 %770  ;;  %v772_v21 = vrot.slane %v769_v19, 4 }
 0x172   : > { %v773_v22 = vrot.slane %v771_v20, 4 }
 0x173   : > { %v2524_v23 = vpop.permute.xlu2 %907 }
 0x174   : > { %v774_v24 = vsel %vm321_vm0, %v772_v21, %v773_v22 }
 0x175   : > { %v776_v4 = vsel %vm775_vm11, %v769_v19, %v774_v24  ;;  %vm1111_vm11 = vcmask 220160  }
 0x176   : > { %778 = vst [vmem:[#allocation2 + $0x28] sm:$0x33] %v776_v4  ;;  %1038 = vrot.lane.b32.xlu0 %v2456_v48, %s2182_s15 }
 0x177   : > { %1040 = vrot.lane.b32.xlu1 %v2469_v6, %s2182_s15 }
 0x178   : > { %v804_v26 = vpop.permute.xlu0 %803 }
 0x179   : > { %1175 = vrot.lane.b32.xlu2 %v2462_v58, %s2183_s28  ;;  %v780_v44 = vpop.permute.xlu1 %779  ;;  %v806_v27 = vrot.slane %v804_v26, 4 }
 0x17a   : > { %v783_v30 = vrot.slane %v780_v44, 4 }
 0x17b   : > { %v807_v31 = vsel %vm321_vm0, %v805_v41, %v806_v27  ;;  %v2533_v1 = vpop.permute.xlu2 %1071 }
 0x17c   : > { %v785_v32 = vsel %vm321_vm0, %v783_v30, %v784_v29  ;;  %v809_v33 = vsel %vm808_vm12, %v2494_v39, %v807_v31  ;;  %vm1217_vm12 = vcmask 605184  }
 0x17d   : > { %v787_v34 = vsel %vm786_vm13, %v780_v44, %v785_v32  ;;  %811 = vst [vmem:[#allocation2 + $0x78] sm:$0xcc] %v809_v33  ;;  %vm1250_vm13 = vcmask 211968  }
 0x17e   : > { %789 = vst [vmem:[#allocation2 + $0x40] sm:$0xcc] %v787_v34  ;;  %1177 = vrot.lane.b32.xlu0 %v2471_v9, %s2183_s28 }
 0x17f   : > { %478 = vrot.lane.b32.xlu1 %v2336_v7, %s2151_s7  ;;  %s2185_s7 = smov 125  }
 0x180   : > { %v826_v36 = vpop.permute.xlu0 %825 }
 0x181   : > { %613 = vrot.lane.b32.xlu2 %v2356_v35, %s2184_s29  ;;  %v921_v42 = vpop.permute.xlu1 %920  ;;  %v828_v45 = vrot.slane %v826_v36, 4 }
 0x182   : > { %v923_v56 = vrot.slane %v921_v42, 4 }
 0x183   : > { %v829_v46 = vsel %vm321_vm0, %v827_v38, %v828_v45  ;;  %v2543_v39 = vpop.permute.xlu2 %1095 }
 0x184   : > { %v831_v50 = vsel %vm830_vm14, %v2508_v55, %v829_v46  ;;  %v1810_v51 = vld [vmem:[#allocation2 + $0x74] sm:$0xf0]  ;;  %v1751_v53 = vld [vmem:[#allocation2 + $0x78] sm:$0xf0]  ;;  %v1098_v10 = vrot.slane %v2543_v39, 4  ;;  %vm1195_vm14 = vcmask 867328  }
 0x185   : > { %833 = vst [vmem:[#allocation2 + $0xb0] sm:$0xcc] %v831_v50  ;;  %v1750_v7 = vor.u32 %v1810_v51, %v1749_v49  ;;  %v1754_v54 = vor.u32 %v1809_v52, %v1751_v53 }
 0x186   : > { %615 = vrot.lane.b32.xlu0 %v2368_v43, %s2184_s29 }
 0x187   : > { %757 = vrot.lane.b32.xlu1 %v2411_v25, %s2185_s7  ;;  %1426 = vmatpush.bf16.msra.mxu0 %v1750_v7 }
 0x188   : > { %1454 = vmatpush.bf16.msra.mxu2 %v1754_v54  ;;  %v919_v35 = vpop.permute.xlu0 %918 }
 0x189   : > { %759 = vrot.lane.b32.xlu2 %v2417_v28, %s2185_s7  ;;  %v963_v57 = vpop.permute.xlu1 %962  ;;  %v922_v63 = vrot.slane %v919_v35, 4 }
 0x18a   : > { %v966_v60 = vrot.slane %v963_v57, 4 }
 0x18b   : > { %v924_v62 = vsel %vm321_vm0, %v922_v63, %v923_v56  ;;  %v2551_v0 = vpop.permute.xlu2 %1060 }
 0x18c   : > { %v968_v43 = vsel %vm321_vm0, %v966_v60, %v967_v59  ;;  %v926_v25 = vsel %vm925_vm15, %v919_v35, %v924_v62  ;;  %v1064_v33 = vrot.slane %v2551_v0, 4  ;;  %vm1239_vm15 = vcmask 343040  }
 0x18d   : > { %v970_v55 = vsel %vm969_vm3, %v963_v57, %v968_v43  ;;  %928 = vst [vmem:[#allocation2 + $0x48] sm:$0x33] %v926_v25  ;;  %vm1419_vm3 = vcmask 1041408  }
 0x18e   : > { %972 = vst [vmem:[#allocation2 + $0xb8] sm:$0x33] %v970_v55  ;;  %940 = vrot.lane.b32.xlu0 %v2434_v40, %s2186_s30  ;;  %v911_v40 = vrot.slane %v2524_v23, 4 }
 0x18f   : > { %942 = vrot.lane.b32.xlu1 %v2427_v37, %s2186_s30 }
 0x190   : > { %v930_v28 = vpop.permute.xlu0 %929 }
 0x191   : > { %1082 = vrot.lane.b32.xlu2 %v2456_v48, %s2187_s5  ;;  %v932_v2 = vpop.permute.xlu1 %931  ;;  %v933_v3 = vrot.slane %v930_v28, 4 }
 0x192   : > { %v934_v5 = vrot.slane %v932_v2, 4 }
 0x193   : > { %v2557_v47 = vpop.permute.xlu2 %1104 }
 0x194   : > { %v935_v61 = vsel %vm321_vm0, %v933_v3, %v934_v5  ;;  %v1108_v39 = vrot.slane %v2557_v47, 4 }
 0x195   : > { %v937_v8 = vsel %vm936_vm4, %v930_v28, %v935_v61  ;;  %vm677_vm4 = vcmask 375808  }
 0x196   : > { %939 = vst [vmem:[#allocation2 + $0x60] sm:$0xcc] %v937_v8  ;;  %1084 = vrot.lane.b32.xlu0 %v2469_v6, %s2187_s5  ;;  %v1075_v6 = vrot.slane %v2533_v1, 4 }
 0x197   : > { %1221 = vrot.lane.b32.xlu1 %v2462_v58, %s2188_s6 }
 0x198   : > { %v910_v37 = vpop.permute.xlu0 %909 }
 0x199   : > { %1223 = vrot.lane.b32.xlu2 %v2471_v9, %s2188_s6  ;;  %v1052_v48 = vpop.permute.xlu1 %1051  ;;  %v912_v12 = vrot.slane %v910_v37, 4 }
 0x19a   : > { %v1054_v24 = vrot.slane %v1052_v48, 4 }
 0x19b   : > { %v913_v13 = vsel %vm321_vm0, %v911_v40, %v912_v12  ;;  %v1202_v14 = vpop.permute.xlu2 %1201 }
 0x19c   : > { %v915_v15 = vsel %vm914_vm5, %v2524_v23, %v913_v13  ;;  %v1204_v41 = vrot.slane %v1202_v14, 4  ;;  %v1806_v14 = vld [vmem:[#allocation2 + $0x54] sm:$0xf0]  ;;  %vm538_vm5 = vcmask 384000  }
 0x19d   : > { %917 = vst [vmem:[#allocation2 + $0x28] sm:$0xcc] %v915_v15  ;;  %v1741_v28 = vld [vmem:[#allocation2 + $0x60] sm:$0xf]  ;;  %v1807_v2 = vld [vmem:[#allocation2 + $0x64] sm:$0xf] }
 0x19e   : > { %v1735_v15 = vld [vmem:[#allocation2 + $0x58] sm:$0xf0] }
 0x1a0   : > { %v1074_v16 = vpop.permute.xlu0 %1073 }
 0x1a1   : > { %v1094_v17 = vpop.permute.xlu1 %1093  ;;  %v1076_v58 = vrot.slane %v1074_v16, 4 }
 0x1a2   : > { %v1097_v18 = vrot.slane %v1094_v17, 4 }
 0x1a3   : > { %v1077_v9 = vsel %vm321_vm0, %v1075_v6, %v1076_v58  ;;  %v1213_v19 = vpop.permute.xlu2 %1212 }
 0x1a4   : > { %v1099_v20 = vsel %vm321_vm0, %v1097_v18, %v1098_v10  ;;  %v1079_v21 = vsel %vm1078_vm6, %v2533_v1, %v1077_v9  ;;  %v1215_v51 = vrot.slane %v1213_v19, 4  ;;  %vm819_vm6 = vcmask 367616  }
 0x1a5   : > { %v1101_v22 = vsel %vm1100_vm7, %v1094_v17, %v1099_v20  ;;  %1081 = vst [vmem:[#allocation2 + $0x68] sm:$0x33] %v1079_v21  ;;  %v1725_v21 = vld [vmem:[#allocation2 + $0x40] sm:$0xf]  ;;  %vm901_vm7 = vcmask 1014784  }
 0x1a6   : > { %1103 = vst [vmem:[#allocation2 + $0xa0] sm:$0x33] %v1101_v22  ;;  %v1803_v22 = vld [vmem:[#allocation2 + $0x44] sm:$0xf] }
 0x1a8   : > { %v1050_v23 = vpop.permute.xlu0 %1049 }
 0x1a9   : > { %v1200_v4 = vpop.permute.xlu1 %1199  ;;  %v1053_v26 = vrot.slane %v1050_v23, 4 }
 0x1aa   : > { %v1203_v44 = vrot.slane %v1200_v4, 4 }
 0x1ab   : > { %v1055_v27 = vsel %vm321_vm0, %v1053_v26, %v1054_v24  ;;  %v1191_v32 = vpop.permute.xlu2 %1190 }
 0x1ac   : > { %v1205_v29 = vsel %vm321_vm0, %v1203_v44, %v1204_v41  ;;  %v1057_v30 = vsel %vm1056_vm8, %v1050_v23, %v1055_v27  ;;  %v1193_v62 = vrot.slane %v1191_v32, 4  ;;  %vm958_vm8 = vcmask 359424  }
 0x1ad   : > { %v1207_v31 = vsel %vm1206_vm9, %v1200_v4, %v1205_v29  ;;  %1059 = vst [vmem:[#allocation2 + $0x30] sm:$0x33] %v1057_v30  ;;  %v1802_v29 = vld [vmem:[#allocation2 + $0x34] sm:$0xf0]  ;;  %vm1045_vm9 = vcmask 1006592  }
 0x1ae   : > { %1209 = vst [vmem:[#allocation2 + $0x50] sm:$0x33] %v1207_v31 }
 0x1b0   : > { %v1063_v1 = vpop.permute.xlu0 %1062 }
 0x1b1   : > { %v1246_v34 = vpop.permute.xlu1 %1245  ;;  %v1065_v36 = vrot.slane %v1063_v1, 4  ;;  %v1719_v1 = vld [vmem:[#allocation2 + $0x38] sm:$0xf0] }
 0x1b2   : > { %v1248_v57 = vrot.slane %v1246_v34, 4 }
 0x1b3   : > { %v1066_v38 = vsel %vm321_vm0, %v1064_v33, %v1065_v36  ;;  %v2576_v45 = vpop.permute.xlu2 %531 }
 0x1b4   : > { %v1068_v42 = vsel %vm1067_vm10, %v2551_v0, %v1066_v38  ;;  %v535_v31 = vrot.slane %v2576_v45, 4  ;;  %vm1182_vm10 = vcmask 998400  }
 0x1b5   : > { %1070 = vst [vmem:[#allocation2 + $0x48] sm:$0xcc] %v1068_v42  ;;  %v1733_v37 = vld [vmem:[#allocation2 + $0x50] sm:$0xf]  ;;  %v1805_v40 = vld [vmem:[#allocation2 + $0x54] sm:$0xf] }
 0x1b6   : > { %v1734_v6 = vor.u32 %v1806_v14, %v1733_v37  ;;  %v1738_v17 = vor.u32 %v1805_v40, %v1735_v15 }
 0x1b8   : > { %v1107_v46 = vpop.permute.xlu0 %1106 }
 0x1b9   : > { %v1211_v49 = vpop.permute.xlu1 %1210  ;;  %v1109_v50 = vrot.slane %v1107_v46, 4 }
 0x1ba   : > { %v1214_v52 = vrot.slane %v1211_v49, 4 }
 0x1bb   : > { %v1110_v53 = vsel %vm321_vm0, %v1108_v39, %v1109_v50  ;;  %v2582_v63 = vpop.permute.xlu2 %672 }
 0x1bc   : > { %v1216_v7 = vsel %vm321_vm0, %v1214_v52, %v1215_v51  ;;  %v1112_v54 = vsel %vm1111_vm11, %v2557_v47, %v1110_v53  ;;  %v1804_v10 = vld [vmem:[#allocation2 + $0x44] sm:$0xf0]  ;;  %v1727_v18 = vld [vmem:[#allocation2 + $0x48] sm:$0xf0]  ;;  %v675_v39 = vrot.slane %v2582_v63, 4  ;;  %vm483_vm11 = vcmask 1039360  }
 0x1bd   : > { %v1218_v35 = vsel %vm1217_vm12, %v1211_v49, %v1216_v7  ;;  %1114 = vst [vmem:[#allocation2 + $0xb8] sm:$0xcc] %v1112_v54  ;;  %v1726_v4 = vor.u32 %v1804_v10, %v1725_v21  ;;  %v1730_v26 = vor.u32 %v1803_v22, %v1727_v18  ;;  %v1781_v52 = vld [vmem:[#allocation2 + $0xb0] sm:$0xf]  ;;  %v1817_v54 = vld [vmem:[#allocation2 + $0xb4] sm:$0xf] }
 0x1be   : > { %1220 = vst [vmem:[#allocation2 + $0x68] sm:$0xcc] %v1218_v35  ;;  %v1800_v35 = vld [vmem:[#allocation2 + $0x24] sm:$0xf0]  ;;  %vm620_vm12 = vcmask 1031168  }
 0x1c0   : > { %v1244_v56 = vpop.permute.xlu0 %1243 }
 0x1c1   : > { %v1189_v59 = vpop.permute.xlu1 %1188  ;;  %v1247_v60 = vrot.slane %v1244_v56, 4 }
 0x1c2   : > { %v1192_v0 = vrot.slane %v1189_v59, 4 }
 0x1c3   : > { %v1249_v43 = vsel %vm321_vm0, %v1247_v60, %v1248_v57  ;;  %v2586_v58 = vpop.permute.xlu2 %894  ;;  %v1709_v60 = vld [vmem:[#allocation2 + $0x20] sm:$0xf] }
 0x1c4   : > { %v1194_v25 = vsel %vm321_vm0, %v1192_v0, %v1193_v62  ;;  %v1251_v55 = vsel %vm1250_vm13, %v1244_v56, %v1249_v43  ;;  %v1818_v33 = vld [vmem:[#allocation2 + $0xb4] sm:$0xf0]  ;;  %v1783_v46 = vld [vmem:[#allocation2 + $0xb8] sm:$0xf0]  ;;  %v1711_v56 = vld [vmem:[#allocation2 + $0x28] sm:$0xf0] }
 0x1c5   : > { %v1196_v3 = vsel %vm1195_vm14, %v1189_v59, %v1194_v25  ;;  %1253 = vst [vmem:[#allocation2 + $0xc0] sm:$0x33] %v1251_v55  ;;  %v1808_v5 = vld [vmem:[#allocation2 + $0x64] sm:$0xf0]  ;;  %v1743_v47 = vld [vmem:[#allocation2 + $0x68] sm:$0xf0]  ;;  %v1782_v7 = vor.u32 %v1818_v33, %v1781_v52  ;;  %v1786_v63 = vor.u32 %v1817_v54, %v1783_v46 }
 0x1c6   : > { %1198 = vst [vmem:[#allocation2 + $0x30] sm:$0xcc] %v1196_v3  ;;  %v1742_v61 = vor.u32 %v1808_v5, %v1741_v28  ;;  %v1746_v8 = vor.u32 %v1807_v2, %v1743_v47  ;;  %v1799_v62 = vld [vmem:[#allocation2 + $0x24] sm:$0xf]  ;;  %v1710_v28 = vor.u32 %v1800_v35, %v1709_v60  ;;  %v1816_v3 = vld [vmem:[#allocation2 + $0xa4] sm:$0xf0] }
 0x1c7   : > { %v1714_v2 = vor.u32 %v1799_v62, %v1711_v56  ;;  %v1775_v5 = vld [vmem:[#allocation2 + $0xa8] sm:$0xf0]  ;;  %v898_v15 = vrot.slane %v2586_v58, 4  ;;  %vm764_vm13 = vcmask 1022976   ;;  %vm947_vm14 = vcmask 490496  }
 0x1c8   : > { %1427 = vmatpush.bf16.msra.mxu0 %v1742_v61  ;;  %1455 = vmatpush.bf16.msra.mxu2 %v1746_v8  ;;  %v1233_v48 = vpop.permute.xlu0 %1232 }
 0x1c9   : > { %v1235_v12 = vpop.permute.xlu1 %1234  ;;  %v1236_v13 = vrot.slane %v1233_v48, 4 }
 0x1ca   : > { %v1237_v16 = vrot.slane %v1235_v12, 4 }
 0x1cb   : > { %v954_v0 = vpop.permute.xlu2 %953 }
 0x1cc   : > { %v1238_v9 = vsel %vm321_vm0, %v1236_v13, %v1237_v16  ;;  %1428 = vmatpush.bf16.msra.mxu0 %v1734_v6  ;;  %1456 = vmatpush.bf16.msra.mxu2 %v1738_v17  ;;  %v1280_v19 = vld [vmem:[#allocation2 + $0xc0] sm:$0x33]  ;;  %v956_v17 = vrot.slane %v954_v0, 4 }
 0x1cd   : > { %v1240_v20 = vsel %vm1239_vm15, %v1233_v48, %v1238_v9  ;;  %v1363_v23 = vunpack.c.l.b16 %v1280_v19  ;;  %v1364_v24 = vunpack.c.h.b16 %v1280_v19  ;;  %v1717_v27 = vld [vmem:[#allocation2 + $0x30] sm:$0xf]  ;;  %v1801_v30 = vld [vmem:[#allocation2 + $0x34] sm:$0xf]  ;;  %vm1089_vm15 = vcmask 482304  }
 0x1ce   : > { %1242 = vst [vmem:[#allocation2 + $0xa0] sm:$0xcc] %v1240_v20  ;;  %v1718_v50 = vor.u32 %v1802_v29, %v1717_v27  ;;  %v1722_v51 = vor.u32 %v1801_v30, %v1719_v1 }
 0x1cf   : > { %v1389_v41 = vpack.c.b16 %v1363_v23, %v1363_v23  ;;  %v1390_v44 = vpack.c.b16 %v1364_v24, %v1364_v24 }
 0x1d0   : > { %1429 = vmatpush.bf16.msra.mxu0 %v1726_v4  ;;  %1457 = vmatpush.bf16.msra.mxu2 %v1730_v26  ;;  %v534_v32 = vpop.permute.xlu0 %533 }
 0x1d1   : > { %v671_v34 = vpop.permute.xlu1 %670  ;;  %v536_v36 = vrot.slane %v534_v32, 4  ;;  %v1421_v38 = vsel %vm1419_vm3, %v1389_v41, 0  ;;  %v1424_v42 = vsel %vm1419_vm3, %v1390_v44, 0  ;;  %vm1228_vm3 = vcmask 474112  }
 0x1d2   : > { %v674_v49 = vrot.slane %v671_v34, 4  ;;  %1443 = vmatpush.bf16.msra.mxu1 %v1421_v38  ;;  %1471 = vmatpush.bf16.msra.mxu3 %v1424_v42 }
 0x1d3   : > { %v537_v53 = vsel %vm321_vm0, %v535_v31, %v536_v36  ;;  %v1176_v13 = vpop.permute.xlu2 %1175  ;;  %v480_v36 = vrot.slane %v2476_v11, 4 }
 0x1d4   : > { %v676_v57 = vsel %vm321_vm0, %v674_v49, %v675_v39  ;;  %v539_v59 = vsel %vm538_vm5, %v2576_v45, %v537_v53  ;;  %1430 = vmatpush.bf16.msra.mxu0 %v1718_v50  ;;  %1458 = vmatpush.bf16.msra.mxu2 %v1722_v51  ;;  %v1179_v1 = vrot.slane %v1176_v13, 4  ;;  %vm1491_vm5 = vcmask 11264  }
 0x1d5   : > { %v678_v43 = vsel %vm677_vm4, %v671_v34, %v676_v57  ;;  %541 = vst [vmem:[#allocation2 + $0x90] sm:$0x33] %v539_v59  ;;  %v1773_v25 = vld [vmem:[#allocation2 + $0xa0] sm:$0xf]  ;;  %v1815_v55 = vld [vmem:[#allocation2 + $0xa4] sm:$0xf] }
 0x1d6   : > { %680 = vst [vmem:[#allocation2 + $0x90] sm:$0xcc] %v678_v43  ;;  %1444 = vmatpush.bf16.msra.mxu1 %v1782_v7  ;;  %1472 = vmatpush.bf16.msra.mxu3 %v1786_v63  ;;  %v1774_v47 = vor.u32 %v1816_v3, %v1773_v25  ;;  %v1778_v61 = vor.u32 %v1815_v55, %v1775_v5  ;;  %vm1415_vm4 = vcmask 556032  }
 0x1d8   : > { %1431 = vmatpush.bf16.msra.mxu0 %v1710_v28  ;;  %1459 = vmatpush.bf16.msra.mxu2 %v1714_v2  ;;  %v813_v45 = vpop.permute.xlu0 %812 }
 0x1d9   : > { %v815_v8 = vpop.permute.xlu1 %814  ;;  %v816_v37 = vrot.slane %v813_v45, 4 }
 0x1da   : > { %v817_v40 = vrot.slane %v815_v8, 4  ;;  %1445 = vmatpush.bf16.msra.mxu1 %v1774_v47  ;;  %1473 = vmatpush.bf16.msra.mxu3 %v1778_v61  ;;  %v1685_v61 = vld [vmem:[#allocation5] sm:$0xf]  ;;  %v1794_v8 = vld [vmem:[#allocation5 + $0x4] sm:$0x30] }
 0x1db   : > { %v614_v22 = vpop.permute.xlu2 %613 }
 0x1dc   : > { %v818_v48 = vsel %vm321_vm0, %v816_v37, %v817_v40  ;;  %v617_v52 = vrot.slane %v614_v22, 4 }
 0x1dd   : > { %v820_v12 = vsel %vm819_vm6, %v813_v45, %v818_v48  ;;  %v1765_v41 = vld [vmem:[#allocation2 + $0x90] sm:$0xf]  ;;  %v1813_v29 = vld [vmem:[#allocation2 + $0x94] sm:$0xf] }
 0x1de   : > { %822 = vst [vmem:[#allocation2 + $0x98] sm:$0x33] %v820_v12 }
 0x1e0   : > { %v897_v14 = vpop.permute.xlu0 %896 }
 0x1e1   : > { %v952_v16 = vpop.permute.xlu1 %951  ;;  %v899_v6 = vrot.slane %v897_v14, 4 }
 0x1e2   : > { %v955_v10 = vrot.slane %v952_v16, 4 }
 0x1e3   : > { %v900_v18 = vsel %vm321_vm0, %v898_v15, %v899_v6  ;;  %v760_v42 = vpop.permute.xlu2 %759 }
 0x1e4   : > { %v957_v9 = vsel %vm321_vm0, %v955_v10, %v956_v17  ;;  %v902_v19 = vsel %vm901_vm7, %v2586_v58, %v900_v18  ;;  %v762_v54 = vrot.slane %v760_v42, 4 }
 0x1e5   : > { %v959_v20 = vsel %vm958_vm8, %v952_v16, %v957_v9  ;;  %904 = vst [vmem:[#allocation2 + $0x10] sm:$0x33] %v902_v19  ;;  %v1686_v16 = vor.u32 %v1794_v8, %v1685_v61 }
 0x1e6   : > { %961 = vst [vmem:[#allocation2 + $0x98] sm:$0xcc] %v959_v20 }
 0x1e8   : > { %v1039_v21 = vpop.permute.xlu0 %1038 }
 0x1e9   : > { %v1041_v23 = vpop.permute.xlu1 %1040  ;;  %v1042_v24 = vrot.slane %v1039_v21, 4 }
 0x1ea   : > { %v1043_v4 = vrot.slane %v1041_v23, 4 }
 0x1ec   : > { %v1044_v26 = vsel %vm321_vm0, %v1042_v24, %v1043_v4  ;;  %v1793_v24 = vld [vmem:[#allocation5 + $0x4] sm:$0xf] }
 0x1ed   : > { %v1046_v44 = vsel %vm1045_vm9, %v1039_v21, %v1044_v26  ;;  %v1814_v27 = vld [vmem:[#allocation2 + $0x94] sm:$0xf0]  ;;  %v1767_v30 = vld [vmem:[#allocation2 + $0x98] sm:$0xf0] }
 0x1ee   : > { %1048 = vst [vmem:[#allocation2 + $0x10] sm:$0xcc] %v1046_v44  ;;  %v1766_v31 = vor.u32 %v1814_v27, %v1765_v41  ;;  %v1770_v32 = vor.u32 %v1813_v29, %v1767_v30  ;;  %v1687_v41 = vld [vmem:[#allocation5 + $0x8] sm:$0x30] }
 0x1f0   : > { %1446 = vmatpush.bf16.msra.mxu1 %v1766_v31  ;;  %1474 = vmatpush.bf16.msra.mxu3 %v1770_v32  ;;  %v1178_v58 = vpop.permute.xlu0 %1177  ;;  %v1690_v31 = vor.u32 %v1793_v24, %v1687_v41 }
 0x1f1   : > { %v479_v33 = vpop.permute.xlu1 %478  ;;  %v1180_v34 = vrot.slane %v1178_v58, 4 }
 0x1f2   : > { %v481_v38 = vrot.slane %v479_v33, 4 }
 0x1f3   : > { %v1181_v46 = vsel %vm321_vm0, %v1179_v1, %v1180_v34 }
 0x1f4   : > { %v482_v39 = vsel %vm321_vm0, %v480_v36, %v481_v38  ;;  %v1183_v49 = vsel %vm1182_vm10, %v1176_v13, %v1181_v46 }
 0x1f5   : > { %v484_v50 = vsel %vm483_vm11, %v2476_v11, %v482_v39  ;;  %1185 = vst [vmem:[#allocation2 + $0x18] sm:$0x33] %v1183_v49  ;;  %v1701_v57 = vld [vmem:[#allocation2 + $0x10] sm:$0xf]  ;;  %v1797_v62 = vld [vmem:[#allocation2 + $0x14] sm:$0xf]  ;;  %v1083_v11 = vpop.permute.xlu2 %1082 }
 0x1f6   : > { %486 = vst [vmem:[#allocation2] sm:$0xcc] %v484_v50  ;;  %v1086_v17 = vrot.slane %v1083_v11, 4 }
 0x1f8   : > { %v616_v51 = vpop.permute.xlu0 %615 }
 0x1f9   : > { %v758_v53 = vpop.permute.xlu1 %757  ;;  %v618_v7 = vrot.slane %v616_v51, 4 }
 0x1fa   : > { %v761_v35 = vrot.slane %v758_v53, 4 }
 0x1fb   : > { %v619_v56 = vsel %vm321_vm0, %v617_v52, %v618_v7 }
 0x1fc   : > { %v763_v59 = vsel %vm321_vm0, %v761_v35, %v762_v54  ;;  %v621_v63 = vsel %vm620_vm12, %v614_v22, %v619_v56  ;;  %v1798_v60 = vld [vmem:[#allocation2 + $0x14] sm:$0xf0]  ;;  %v1703_v0 = vld [vmem:[#allocation2 + $0x18] sm:$0xf0] }
 0x1fd   : > { %v765_v43 = vsel %vm764_vm13, %v758_v53, %v763_v59  ;;  %623 = vst [vmem:[#allocation2 + $0x8] sm:$0x33] %v621_v63  ;;  %v1702_v25 = vor.u32 %v1798_v60, %v1701_v57  ;;  %v1706_v55 = vor.u32 %v1797_v62, %v1703_v0  ;;  %v1693_v47 = vld [vmem:[#allocation2] sm:$0xf]  ;;  %v1795_v48 = vld [vmem:[#allocation2 + $0x4] sm:$0xf]  ;;  %v1224_v15 = vpop.permute.xlu2 %1223 }
 0x1fe   : > { %767 = vst [vmem:[#allocation2 + $0x8] sm:$0xcc] %v765_v43  ;;  %v1226_v9 = vrot.slane %v1224_v15, 4  ;;  %v2189_v43 = vmov 0.0  }
 0x1ff   : > { %1432 = vmatpush.bf16.msra.mxu0 %v1702_v25  ;;  %1460 = vmatpush.bf16.msra.mxu2 %v1706_v55  ;;  %1490 = vst.msk [vmem:[%s288_s13] sm:$0xff] %vm591_vm2, %v2189_v43 }
 0x200   : > { %v941_v28 = vpop.permute.xlu0 %940  ;;  %1492 = vst.msk [vmem:[%s288_s13 + $0x8] sm:$0xf] %vm1491_vm5, %v2189_v43 }
 0x201   : > { %v943_v2 = vpop.permute.xlu1 %942  ;;  %v944_v3 = vrot.slane %v941_v28, 4 }
 0x202   : > { %v945_v5 = vrot.slane %v943_v2, 4 }
 0x204   : > { %v946_v45 = vsel %vm321_vm0, %v944_v3, %v945_v5 }
 0x205   : > { %v948_v37 = vsel %vm947_vm14, %v941_v28, %v946_v45  ;;  %v1796_v40 = vld [vmem:[#allocation2 + $0x4] sm:$0xf0]  ;;  %v1695_v12 = vld [vmem:[#allocation2 + $0x8] sm:$0xf0] }
 0x206   : > { %950 = vst [vmem:[#allocation2 + $0x80] sm:$0x33] %v948_v37  ;;  %v1694_v13 = vor.u32 %v1796_v40, %v1693_v47  ;;  %v1698_v14 = vor.u32 %v1795_v48, %v1695_v12  ;;  %v1513_v25 = vld [vmem:[%s288_s13] sm:$0xff] }
 0x207   : > { %v1514_v5 = vld [vmem:[%s288_s13 + $0x8] sm:$0xf] }
 0x208   : > { %1433 = vmatpush.bf16.msra.mxu0 %v1694_v13  ;;  %1461 = vmatpush.bf16.msra.mxu2 %v1698_v14  ;;  %v1085_v6 = vpop.permute.xlu0 %1084 }
 0x209   : > { %v1222_v10 = vpop.permute.xlu1 %1221  ;;  %v1087_v18 = vrot.slane %v1085_v6, 4 }
 0x20a   : > { %v1225_v19 = vrot.slane %v1222_v10, 4 }
 0x20b   : > { %v1088_v20 = vsel %vm321_vm0, %v1086_v17, %v1087_v18  ;;  %1462 = vmatmul.bf16.vlgmr.msra.gmra.mxu2 %v1686_v16  ;;  %1434 = vmatmul.bf16.vlgmr.msra.gmra.mxu0 %v1686_v16 }
 0x20c   : > { %v1227_v21 = vsel %vm321_vm0, %v1225_v19, %v1226_v9  ;;  %v1090_v22 = vsel %vm1089_vm15, %v1083_v11, %v1088_v20 }
 0x20d   : > { %v1229_v23 = vsel %vm1228_vm3, %v1222_v10, %v1227_v21  ;;  %1092 = vst [vmem:[#allocation2 + $0x80] sm:$0xcc] %v1090_v22 }
 0x20e   : > { %1231 = vst [vmem:[#allocation2 + $0x88] sm:$0x33] %v1229_v23 }
 0x214   : > { %v1757_v4 = vld [vmem:[#allocation2 + $0x80] sm:$0xf]  ;;  %v1811_v26 = vld [vmem:[#allocation2 + $0x84] sm:$0xf] }
 0x215   : > { %v1812_v44 = vld [vmem:[#allocation2 + $0x84] sm:$0xf0]  ;;  %v1759_v27 = vld [vmem:[#allocation2 + $0x88] sm:$0xf0] }
 0x216   : > { %v1758_v29 = vor.u32 %v1812_v44, %v1757_v4  ;;  %v1762_v30 = vor.u32 %v1811_v26, %v1759_v27 }
 0x218   : > { %1447 = vmatpush.bf16.msra.mxu1 %v1758_v29  ;;  %1475 = vmatpush.bf16.msra.mxu3 %v1762_v30 }
 0x21b   : > { %1787 = vmatmul.msk.bf16.vlgmr.msra.gmra.mxu1 %vm1415_vm4, %v1690_v31  ;;  %1788 = vmatmul.msk.bf16.vlgmr.msra.gmra.mxu3 %vm1415_vm4, %v1690_v31 }
 0x288   : > { %v1435_v32 = vpop.f32.mrf.mxu0 }
 0x28e   : > { %v1463_v33 = vpop.f32.mrf.mxu2 }
 0x290   : > { %v1437_v50 = vpop.f32.mrf.mxu0 }
 0x296   : > { %v1465_v53 = vpop.f32.mrf.mxu2 }
 0x298   : > { %v1449_v58 = vpop.f32.mrf.mxu1 }
 0x299   : > { %v1450_v1 = vadd.f32 %v1449_v58, %v1435_v32 }
 0x29b   : > { %v1501_v38 = vmul.f32 %v1450_v1, %v1450_v1 }
 0x29e   : > { %v1477_v34 = vpop.f32.mrf.mxu3 }
 0x29f   : > { %v1478_v36 = vadd.f32 %v1477_v34, %v1463_v33 }
 0x2a0   : > { %v1451_v42 = vpop.f32.mrf.mxu1 }
 0x2a1   : > { %v1482_v46 = vpack.c.bf16 %v1478_v36, %v1450_v1  ;;  %v1493_v39 = vadd.f32 %v1478_v36, %v1450_v1  ;;  %v1502_v49 = vmul.f32 %v1478_v36, %v1478_v36  ;;  %v1452_v51 = vadd.f32 %v1451_v42, %v1437_v50 }
 0x2a3   : > { %1484 = vst [vmem:[%s282_s11] sm:$0xff] %v1482_v46  ;;  %1494 = vadd.xlane.f32.xlu0 %v1493_v39  ;;  %v1505_v52 = vadd.f32 %v1502_v49, %v1501_v38  ;;  %v1503_v35 = vmul.f32 %v1452_v51, %v1452_v51  ;;  %v1496_v57 = vsel %vm321_vm0, %v1452_v51, 0.0 }
 0x2a5   : > { %1506 = vadd.xlane.f32.xlu2 %v1505_v52  ;;  %v1508_v62 = vsel %vm321_vm0, %v1503_v35, 0.0 }
 0x2a6   : > { %v1479_v7 = vpop.f32.mrf.mxu3 }
 0x2a7   : > { %v1480_v54 = vadd.f32 %v1479_v7, %v1465_v53 }
 0x2a9   : > { %v1483_v56 = vpack.c.bf16 %v1480_v54, %v1452_v51  ;;  %v1497_v59 = vsel %vm321_vm0, %v1480_v54, 0.0  ;;  %v1504_v63 = vmul.f32 %v1480_v54, %v1480_v54 }
 0x2aa   : > { %v1498_v60 = vadd.f32 %v1497_v59, %v1496_v57 }
 0x2ab   : > { %1485 = vst [vmem:[%s282_s11 + $0x8] sm:$0x33] %v1483_v56  ;;  %v1509_v0 = vsel %vm321_vm0, %v1504_v63, 0.0 }
 0x2ac   : > { %1499 = vadd.xlane.f32.xlu1 %v1498_v60  ;;  %v1510_v11 = vadd.f32 %v1509_v0, %v1508_v62 }
 0x2ae   : > { %1511 = vadd.xlane.f32.xlu2 %v1510_v11 }
 0x316   : > { %v1495_v55 = vpop.xlane.xlu0 %1494 }
 0x318   : > { %v1507_v28 = vpop.xlane.xlu2 %1506 }
 0x319   : > { %v1515_v2 = vsel %vm452_vm1, %v1495_v55, %v1507_v28 }
 0x31a   : > { %v1517_v3 = vadd.f32 %v1515_v2, %v1513_v25 }
 0x31c   : > { %1519 = vst.msk [vmem:[%s288_s13] sm:$0xff] %vm591_vm2, %v1517_v3 }
 0x31f   : > { %v1500_v45 = vpop.xlane.xlu1 %1499 }
 0x321   : > { %v1512_v47 = vpop.xlane.xlu2 %1511 }
 0x322   : > { %v1516_v61 = vsel %vm452_vm1, %v1500_v45, %v1512_v47 }
 0x323   : > { %v1518_v8 = vadd.f32 %v1516_v61, %v1514_v5 }
 0x325   : > { %1521 = vst.msk [vmem:[%s288_s13 + $0x8] sm:$0xf] %vm1491_vm5, %v1518_v8 }
 0x326 PF: > { %s19_s20 = sadd.s32 1, %s2129_s20   ;;  %s2662_s15 = smov %s2113_s16 }
 0x327   : > { %p16_p2 = scmp.ge.s32.totalorder %s19_s20, 4   ;;  %s2663_s16 = smov %s2117_s17 }
 0x328   : > { %s2664_s17 = smov %s2286_s23  ;;  %s2665_s18 = smov %s2125_s19 }
 0x329   : > { %s2666_s19 = smov %s2668_s10  ;;  %18 = sbr.rel (!%p16_p2) target bundleno = 5 (0x5), region = 103 }
 0x32e   :  { %1568 = vsyncpa [#allocation4], 1 }
 0x32f   :  { %1570 = vsyncpa [#allocation4 + $0x1], 1 }
 0x330   :  { %1571 = vsyncpa [#allocation6], 1 }

</bundles_post_ra>
